<compile_context>
chip_gen: v7x
topology: tpu7x:2x2x1
jax: 0.10.0
libtpu: 0.0.40
codegen_flags: <defaults>
</compile_context>

<pallas_src>
import jax
import jax.numpy as jnp
from jax import lax
from jax.experimental import pallas as pl
from jax.experimental.pallas import tpu as pltpu

HIDDEN = 64
INPUT_SIZE = 1
FC_OUT = 64

G = 2 * HIDDEN          # 128: lane-concatenated hidden width [fwd | bwd]
I2 = 8                  # padded input-feature width (fwd feat -> col 0, bwd -> col 1)
OUT_PAD = 128           # lane-dense padded FC output width
B_SUB = 8               # sublane alignment for the batch dimension


def bigru_kernel(x_ref, wih_ref, gib_ref, whh_ref, bhhn_ref,
                 fcw_ref, fcb_ref, out_ref, gi_ref):
    B = out_ref.shape[0]
    T = x_ref.shape[0] // B

    # Hoisted input projection: one matmul covers every timestep and both
    # directions; r/z biases (bih+bhh) and the n-gate bih are pre-folded.
    gi_ref[...] = (
        jnp.dot(x_ref[...], wih_ref[...], preferred_element_type=jnp.float32)
        + gib_ref[...])

    # Hoisted (1,G)->(B,G) broadcast of the n-gate hidden bias: 1 vreg, done once.
    bhh_nb = jnp.broadcast_to(bhhn_ref[...], (B, G))

    def step(t, h):
        row = pl.multiple_of(t * B, B_SUB)
        gi = gi_ref[pl.ds(row, B), :]                                   # (B, 384)
        # Read whh from VMEM inside the step: keeps the (128,384) f32 weight
        # (48 vregs) out of the carried live range; Mosaic streams it into the
        # MXU per step instead of spilling it across the unrolled loop.
        gh = jnp.dot(h, whh_ref[...], preferred_element_type=jnp.float32)  # (B, 384)
        r = jax.nn.sigmoid(gi[:, 0:G] + gh[:, 0:G])
        z = jax.nn.sigmoid(gi[:, G:2 * G] + gh[:, G:2 * G])
        n = jnp.tanh(gi[:, 2 * G:3 * G] + r * (gh[:, 2 * G:3 * G] + bhh_nb))
        return (1.0 - z) * n + z * h

    h0 = jnp.zeros((B, G), jnp.float32)
    h = lax.fori_loop(0, T, step, h0, unroll=min(T, 8))

    # fc([h_fwd | h_bwd]); dropout is identity in eval mode.
    out_ref[...] = (jnp.dot(h, fcw_ref[...], preferred_element_type=jnp.float32)
                    + fcb_ref[...])


def _pack_params(p):
    H = HIDDEN
    f32 = jnp.float32
    wih_f = jnp.asarray(p['wih_f'], f32)
    wih_b = jnp.asarray(p['wih_b'], f32)
    whh_f = jnp.asarray(p['whh_f'], f32)
    whh_b = jnp.asarray(p['whh_b'], f32)
    bih_f = jnp.asarray(p['bih_f'], f32)
    bih_b = jnp.asarray(p['bih_b'], f32)
    bhh_f = jnp.asarray(p['bhh_f'], f32)
    bhh_b = jnp.asarray(p['bhh_b'], f32)

    # Input-projection weights: (I2, 3G); columns = [r_f|r_b | z_f|z_b | n_f|n_b].
    wih_cat = jnp.zeros((I2, 3 * G), f32)
    for g in range(3):  # 0:r 1:z 2:n
        wih_cat = wih_cat.at[0:INPUT_SIZE, g * G:g * G + H].set(
            wih_f[g * H:(g + 1) * H].T)
        wih_cat = wih_cat.at[INPUT_SIZE:2 * INPUT_SIZE, g * G + H:(g + 1) * G].set(
            wih_b[g * H:(g + 1) * H].T)

    # Folded input-side biases: (bih + bhh) for r/z; bih only for n.
    gib = jnp.concatenate([
        bih_f[0:H] + bhh_f[0:H], bih_b[0:H] + bhh_b[0:H],                  # r
        bih_f[H:2 * H] + bhh_f[H:2 * H], bih_b[H:2 * H] + bhh_b[H:2 * H],  # z
        bih_f[2 * H:3 * H], bih_b[2 * H:3 * H],                            # n
    ]).reshape(1, 3 * G)

    # Block-diagonal recurrent weights: rows 0:64 <- h_fwd, rows 64:128 <- h_bwd.
    whh_cat = jnp.zeros((G, 3 * G), f32)
    for g in range(3):
        whh_cat = whh_cat.at[0:H, g * G:g * G + H].set(whh_f[g * H:(g + 1) * H].T)
        whh_cat = whh_cat.at[H:G, g * G + H:(g + 1) * G].set(whh_b[g * H:(g + 1) * H].T)

    bhhn = jnp.concatenate([bhh_f[2 * H:3 * H], bhh_b[2 * H:3 * H]]).reshape(1, G)

    fcw = jnp.zeros((G, OUT_PAD), f32).at[:, :FC_OUT].set(jnp.asarray(p['fc_w'], f32).T)
    fcb = jnp.zeros((1, OUT_PAD), f32).at[:, :FC_OUT].set(jnp.asarray(p['fc_b'], f32))
    return wih_cat, gib, whh_cat, bhhn, fcw, fcb


def bigru_forward(x, p):
    B, T, _ = x.shape
    B_pad = ((max(B, 1) + B_SUB - 1) // B_SUB) * B_SUB

    # Forward + time-reversed streams, time-major, batch padded to 8 sublanes.
    # Single concat/transpose/pad chain (no zeros+scatter); XLA fuses this into
    # one producer fusion feeding the kernel.
    xf = x[:, :, :INPUT_SIZE]
    xb = x[:, ::-1, :INPUT_SIZE]
    x_pair = jnp.transpose(jnp.concatenate([xf, xb], axis=-1),
                           (1, 0, 2)).astype(jnp.float32)          # (T, B, 2)
    x_flat = jnp.pad(
        x_pair, ((0, 0), (0, B_pad - B), (0, I2 - 2 * INPUT_SIZE))
    ).reshape(T * B_pad, I2)

    wih_cat, gib, whh_cat, bhhn, fcw, fcb = _pack_params(p)

    flops = (2 * T * B_pad * I2 * 3 * G        # hoisted input projection
             + 2 * T * B_pad * G * 3 * G       # recurrence (1 matmul / step)
             + 2 * B_pad * G * OUT_PAD)        # final FC
    transcendentals = 3 * T * B_pad * G
    bytes_accessed = 4 * int(x_flat.size + wih_cat.size + gib.size + whh_cat.size
                             + bhhn.size + fcw.size + fcb.size + B_pad * OUT_PAD)

    vmem = pl.BlockSpec(memory_space=pltpu.MemorySpace.VMEM)
    out = pl.pallas_call(
        bigru_kernel,
        out_shape=jax.ShapeDtypeStruct((B_pad, OUT_PAD), jnp.float32),
        in_specs=[vmem] * 7,
        out_specs=vmem,
        # gi slab: 12 KiB per timestep. Fine up to thousands of steps; chunk the
        # input projection over time tiles if T grows toward v7x's VMEM budget.
        scratch_shapes=[pltpu.VMEM((T * B_pad, 3 * G), jnp.float32)],
        cost_estimate=pl.CostEstimate(flops=flops,
                                      transcendentals=transcendentals,
                                      bytes_accessed=bytes_accessed),
    )(x_flat, wih_cat, gib, whh_cat, bhhn, fcw, fcb)
    return out[:B, :FC_OUT]


def ref_forward(x, p):
    """Pure-JAX reference matching torch.nn.GRU (bidirectional, h_n readout) + Linear."""
    B, T, _ = x.shape

    def mm(a, b):
        return jnp.matmul(a, b, precision=lax.Precision.HIGHEST)

    def cell(h, x_t, wih, whh, bih, bhh):
        gi = mm(x_t, wih.T) + bih
        gh = mm(h, whh.T) + bhh
        i_r, i_z, i_n = jnp.split(gi, 3, axis=-1)
        h_r, h_z, h_n = jnp.split(gh, 3, axis=-1)
        r = jax.nn.sigmoid(i_r + h_r)
        z = jax.nn.sigmoid(i_z + h_z)
        n = jnp.tanh(i_n + r * h_n)
        return (1.0 - z) * n + z * h

    hf = jnp.zeros((B, HIDDEN), jnp.float32)
    hb = jnp.zeros((B, HIDDEN), jnp.float32)
    for t in range(T):
        hf = cell(hf, x[:, t, :], p['wih_f'], p['whh_f'], p['bih_f'], p['bhh_f'])
        hb = cell(hb, x[:, T - 1 - t, :], p['wih_b'], p['whh_b'], p['bih_b'], p['bhh_b'])
    h = jnp.concatenate([hf, hb], axis=-1)
    return mm(h, p['fc_w'].T) + p['fc_b']


if __name__ == "__main__":
    key = jax.random.PRNGKey(0)
    B, T = 2, 8
    keys = jax.random.split(key, 11)
    bound = 1.0 / float(jnp.sqrt(HIDDEN))

    def u(k, shape):
        return jax.random.uniform(k, shape, jnp.float32, -bound, bound)

    params = {
        'wih_f': u(keys[0], (3 * HIDDEN, INPUT_SIZE)),
        'whh_f': u(keys[1], (3 * HIDDEN, HIDDEN)),
        'bih_f': u(keys[2], (3 * HIDDEN,)),
        'bhh_f': u(keys[3], (3 * HIDDEN,)),
        'wih_b': u(keys[4], (3 * HIDDEN, INPUT_SIZE)),
        'whh_b': u(keys[5], (3 * HIDDEN, HIDDEN)),
        'bih_b': u(keys[6], (3 * HIDDEN,)),
        'bhh_b': u(keys[7], (3 * HIDDEN,)),
        'fc_w': u(keys[8], (FC_OUT, 2 * HIDDEN)),
        'fc_b': u(keys[9], (FC_OUT,)),
    }
    x = jax.random.normal(keys[10], (B, T, INPUT_SIZE), jnp.float32)

    fwd = jax.jit(bigru_forward)
    out = jax.block_until_ready(fwd(x, params))
    ref = ref_forward(x, params)
    assert out.shape == (B, FC_OUT)
    assert jnp.allclose(out, ref, atol=1e-4, rtol=1e-4), "mismatch vs reference"
    # TODO(synk): nn.Dropout(p=0.3) is treated as identity (eval-mode semantics).
    print("KERNEL_OK")
</pallas_src>

<mosaic_0001>
module attributes {stable_mosaic.version = 11 : i64} {
  func.func @bigru_kernel(%arg0: memref<64x8xf32, #tpu.memory_space<vmem>>, %arg1: memref<8x384xf32, #tpu.memory_space<vmem>>, %arg2: memref<1x384xf32, #tpu.memory_space<vmem>>, %arg3: memref<128x384xf32, #tpu.memory_space<vmem>>, %arg4: memref<1x128xf32, #tpu.memory_space<vmem>>, %arg5: memref<128x128xf32, #tpu.memory_space<vmem>>, %arg6: memref<1x128xf32, #tpu.memory_space<vmem>>, %arg7: memref<8x128xf32, #tpu.memory_space<vmem>>, %arg8: memref<64x384xf32, #tpu.memory_space<vmem>>) attributes {dimension_semantics = [], scalar_prefetch = 0 : i64, scratch_operands = 1 : i64, tpu.core_type = #tpu.core_type<tc>} {
    %c0 = arith.constant 0 : index
    %c0_0 = arith.constant 0 : index
    %0 = vector.load %arg0[%c0, %c0_0] : memref<64x8xf32, #tpu.memory_space<vmem>>, vector<64x8xf32>
    %c0_1 = arith.constant 0 : index
    %c0_2 = arith.constant 0 : index
    %1 = vector.load %arg1[%c0_1, %c0_2] : memref<8x384xf32, #tpu.memory_space<vmem>>, vector<8x384xf32>
    %cst = arith.constant dense<0.000000e+00> : vector<64x384xf32>
    %2 = tpu.matmul %0, %1, %cst {dimension_numbers = #tpu.dot_dimension_numbers<[1], [0], [0], [1], [0, 0, 1, 1], [], []>} : vector<64x8xf32>, vector<8x384xf32>, vector<64x384xf32> -> vector<64x384xf32>
    %c0_3 = arith.constant 0 : index
    %c0_4 = arith.constant 0 : index
    %3 = vector.load %arg2[%c0_3, %c0_4] : memref<1x384xf32, #tpu.memory_space<vmem>>, vector<1x384xf32>
    %4 = vector.broadcast %3 : vector<1x384xf32> to vector<64x384xf32>
    %5 = arith.addf %2, %4 : vector<64x384xf32>
    %c0_5 = arith.constant 0 : index
    %c0_6 = arith.constant 0 : index
    %6 = vector.load %arg8[%c0_5, %c0_6] : memref<64x384xf32, #tpu.memory_space<vmem>>, vector<64x384xf32>
    tpu.vector_store %arg8[%c0_5, %c0_6], %5 {strides = array<i32>} : memref<64x384xf32, #tpu.memory_space<vmem>>, vector<64x384xf32>,
    %c0_7 = arith.constant 0 : index
    %c0_8 = arith.constant 0 : index
    %7 = vector.load %arg4[%c0_7, %c0_8] : memref<1x128xf32, #tpu.memory_space<vmem>>, vector<1x128xf32>
    %8 = vector.shape_cast %7 : vector<1x128xf32> to vector<1x128xf32>
    %9 = vector.broadcast %8 : vector<1x128xf32> to vector<8x128xf32>
    %cst_9 = arith.constant 0.000000e+00 : f32
    %10 = vector.broadcast %cst_9 : f32 to vector<8x128xf32>
    %c0_i32 = arith.constant 0 : i32
    %c8_i32 = arith.constant 8 : i32
    %11 = arith.muli %c0_i32, %c8_i32 : i32
    %12 = tpu.assume_multiple %11, 8 : i32
    %13 = arith.index_cast %12 : i32 to index
    %c0_10 = arith.constant 0 : index
    %14 = vector.load %arg8[%13, %c0_10] : memref<64x384xf32, #tpu.memory_space<vmem>>, vector<8x384xf32>
    %c0_11 = arith.constant 0 : index
    %c0_12 = arith.constant 0 : index
    %15 = vector.load %arg3[%c0_11, %c0_12] : memref<128x384xf32, #tpu.memory_space<vmem>>, vector<128x384xf32>
    %cst_13 = arith.constant dense<0.000000e+00> : vector<8x384xf32>
    %16 = tpu.matmul %10, %15, %cst_13 {dimension_numbers = #tpu.dot_dimension_numbers<[1], [0], [0], [1], [0, 0, 1, 1], [], []>} : vector<8x128xf32>, vector<128x384xf32>, vector<8x384xf32> -> vector<8x384xf32>
    %17 = vector.extract_strided_slice %14 {offsets = [0, 0], sizes = [8, 128], strides = [1, 1]} : vector<8x384xf32> to vector<8x128xf32>
    %18 = vector.extract_strided_slice %16 {offsets = [0, 0], sizes = [8, 128], strides = [1, 1]} : vector<8x384xf32> to vector<8x128xf32>
    %19 = arith.addf %17, %18 : vector<8x128xf32>
    %20 = arith.negf %19 : vector<8x128xf32>
    %21 = math.exp %20 : vector<8x128xf32>
    %cst_14 = arith.constant 1.000000e+00 : f32
    %22 = vector.broadcast %cst_14 : f32 to vector<8x128xf32>
    %23 = arith.addf %22, %21 : vector<8x128xf32>
    %24 = arith.divf %22, %23 : vector<8x128xf32>
    %25 = vector.extract_strided_slice %14 {offsets = [0, 128], sizes = [8, 128], strides = [1, 1]} : vector<8x384xf32> to vector<8x128xf32>
    %26 = vector.extract_strided_slice %16 {offsets = [0, 128], sizes = [8, 128], strides = [1, 1]} : vector<8x384xf32> to vector<8x128xf32>
    %27 = arith.addf %25, %26 : vector<8x128xf32>
    %28 = arith.negf %27 : vector<8x128xf32>
    %29 = math.exp %28 : vector<8x128xf32>
    %cst_15 = arith.constant 1.000000e+00 : f32
    %30 = vector.broadcast %cst_15 : f32 to vector<8x128xf32>
    %31 = arith.addf %30, %29 : vector<8x128xf32>
    %32 = arith.divf %30, %31 : vector<8x128xf32>
    %33 = vector.extract_strided_slice %14 {offsets = [0, 256], sizes = [8, 128], strides = [1, 1]} : vector<8x384xf32> to vector<8x128xf32>
    %34 = vector.extract_strided_slice %16 {offsets = [0, 256], sizes = [8, 128], strides = [1, 1]} : vector<8x384xf32> to vector<8x128xf32>
    %35 = arith.addf %34, %9 : vector<8x128xf32>
    %36 = arith.mulf %24, %35 : vector<8x128xf32>
    %37 = arith.addf %33, %36 : vector<8x128xf32>
    %38 = math.tanh %37 : vector<8x128xf32>
    %cst_16 = arith.constant 1.000000e+00 : f32
    %39 = vector.broadcast %cst_16 : f32 to vector<8x128xf32>
    %40 = arith.subf %39, %32 : vector<8x128xf32>
    %41 = arith.mulf %40, %38 : vector<8x128xf32>
    %42 = arith.mulf %32, %10 : vector<8x128xf32>
    %43 = arith.addf %41, %42 : vector<8x128xf32>
    %c1_i32 = arith.constant 1 : i32
    %c8_i32_17 = arith.constant 8 : i32
    %44 = arith.muli %c1_i32, %c8_i32_17 : i32
    %45 = tpu.assume_multiple %44, 8 : i32
    %46 = arith.index_cast %45 : i32 to index
    %c0_18 = arith.constant 0 : index
    %47 = vector.load %arg8[%46, %c0_18] : memref<64x384xf32, #tpu.memory_space<vmem>>, vector<8x384xf32>
    %c0_19 = arith.constant 0 : index
    %c0_20 = arith.constant 0 : index
    %48 = vector.load %arg3[%c0_19, %c0_20] : memref<128x384xf32, #tpu.memory_space<vmem>>, vector<128x384xf32>
    %cst_21 = arith.constant dense<0.000000e+00> : vector<8x384xf32>
    %49 = tpu.matmul %43, %48, %cst_21 {dimension_numbers = #tpu.dot_dimension_numbers<[1], [0], [0], [1], [0, 0, 1, 1], [], []>} : vector<8x128xf32>, vector<128x384xf32>, vector<8x384xf32> -> vector<8x384xf32>
    %50 = vector.extract_strided_slice %47 {offsets = [0, 0], sizes = [8, 128], strides = [1, 1]} : vector<8x384xf32> to vector<8x128xf32>
    %51 = vector.extract_strided_slice %49 {offsets = [0, 0], sizes = [8, 128], strides = [1, 1]} : vector<8x384xf32> to vector<8x128xf32>
    %52 = arith.addf %50, %51 : vector<8x128xf32>
    %53 = arith.negf %52 : vector<8x128xf32>
    %54 = math.exp %53 : vector<8x128xf32>
    %cst_22 = arith.constant 1.000000e+00 : f32
    %55 = vector.broadcast %cst_22 : f32 to vector<8x128xf32>
    %56 = arith.addf %55, %54 : vector<8x128xf32>
    %57 = arith.divf %55, %56 : vector<8x128xf32>
    %58 = vector.extract_strided_slice %47 {offsets = [0, 128], sizes = [8, 128], strides = [1, 1]} : vector<8x384xf32> to vector<8x128xf32>
    %59 = vector.extract_strided_slice %49 {offsets = [0, 128], sizes = [8, 128], strides = [1, 1]} : vector<8x384xf32> to vector<8x128xf32>
    %60 = arith.addf %58, %59 : vector<8x128xf32>
    %61 = arith.negf %60 : vector<8x128xf32>
    %62 = math.exp %61 : vector<8x128xf32>
    %cst_23 = arith.constant 1.000000e+00 : f32
    %63 = vector.broadcast %cst_23 : f32 to vector<8x128xf32>
    %64 = arith.addf %63, %62 : vector<8x128xf32>
    %65 = arith.divf %63, %64 : vector<8x128xf32>
    %66 = vector.extract_strided_slice %47 {offsets = [0, 256], sizes = [8, 128], strides = [1, 1]} : vector<8x384xf32> to vector<8x128xf32>
    %67 = vector.extract_strided_slice %49 {offsets = [0, 256], sizes = [8, 128], strides = [1, 1]} : vector<8x384xf32> to vector<8x128xf32>
    %68 = arith.addf %67, %9 : vector<8x128xf32>
    %69 = arith.mulf %57, %68 : vector<8x128xf32>
    %70 = arith.addf %66, %69 : vector<8x128xf32>
    %71 = math.tanh %70 : vector<8x128xf32>
    %cst_24 = arith.constant 1.000000e+00 : f32
    %72 = vector.broadcast %cst_24 : f32 to vector<8x128xf32>
    %73 = arith.subf %72, %65 : vector<8x128xf32>
    %74 = arith.mulf %73, %71 : vector<8x128xf32>
    %75 = arith.mulf %65, %43 : vector<8x128xf32>
    %76 = arith.addf %74, %75 : vector<8x128xf32>
    %c2_i32 = arith.constant 2 : i32
    %c8_i32_25 = arith.constant 8 : i32
    %77 = arith.muli %c2_i32, %c8_i32_25 : i32
    %78 = tpu.assume_multiple %77, 8 : i32
    %79 = arith.index_cast %78 : i32 to index
    %c0_26 = arith.constant 0 : index
    %80 = vector.load %arg8[%79, %c0_26] : memref<64x384xf32, #tpu.memory_space<vmem>>, vector<8x384xf32>
    %c0_27 = arith.constant 0 : index
    %c0_28 = arith.constant 0 : index
    %81 = vector.load %arg3[%c0_27, %c0_28] : memref<128x384xf32, #tpu.memory_space<vmem>>, vector<128x384xf32>
    %cst_29 = arith.constant dense<0.000000e+00> : vector<8x384xf32>
    %82 = tpu.matmul %76, %81, %cst_29 {dimension_numbers = #tpu.dot_dimension_numbers<[1], [0], [0], [1], [0, 0, 1, 1], [], []>} : vector<8x128xf32>, vector<128x384xf32>, vector<8x384xf32> -> vector<8x384xf32>
    %83 = vector.extract_strided_slice %80 {offsets = [0, 0], sizes = [8, 128], strides = [1, 1]} : vector<8x384xf32> to vector<8x128xf32>
    %84 = vector.extract_strided_slice %82 {offsets = [0, 0], sizes = [8, 128], strides = [1, 1]} : vector<8x384xf32> to vector<8x128xf32>
    %85 = arith.addf %83, %84 : vector<8x128xf32>
    %86 = arith.negf %85 : vector<8x128xf32>
    %87 = math.exp %86 : vector<8x128xf32>
    %cst_30 = arith.constant 1.000000e+00 : f32
    %88 = vector.broadcast %cst_30 : f32 to vector<8x128xf32>
    %89 = arith.addf %88, %87 : vector<8x128xf32>
    %90 = arith.divf %88, %89 : vector<8x128xf32>
    %91 = vector.extract_strided_slice %80 {offsets = [0, 128], sizes = [8, 128], strides = [1, 1]} : vector<8x384xf32> to vector<8x128xf32>
    %92 = vector.extract_strided_slice %82 {offsets = [0, 128], sizes = [8, 128], strides = [1, 1]} : vector<8x384xf32> to vector<8x128xf32>
    %93 = arith.addf %91, %92 : vector<8x128xf32>
    %94 = arith.negf %93 : vector<8x128xf32>
    %95 = math.exp %94 : vector<8x128xf32>
    %cst_31 = arith.constant 1.000000e+00 : f32
    %96 = vector.broadcast %cst_31 : f32 to vector<8x128xf32>
    %97 = arith.addf %96, %95 : vector<8x128xf32>
    %98 = arith.divf %96, %97 : vector<8x128xf32>
    %99 = vector.extract_strided_slice %80 {offsets = [0, 256], sizes = [8, 128], strides = [1, 1]} : vector<8x384xf32> to vector<8x128xf32>
    %100 = vector.extract_strided_slice %82 {offsets = [0, 256], sizes = [8, 128], strides = [1, 1]} : vector<8x384xf32> to vector<8x128xf32>
    %101 = arith.addf %100, %9 : vector<8x128xf32>
    %102 = arith.mulf %90, %101 : vector<8x128xf32>
    %103 = arith.addf %99, %102 : vector<8x128xf32>
    %104 = math.tanh %103 : vector<8x128xf32>
    %cst_32 = arith.constant 1.000000e+00 : f32
    %105 = vector.broadcast %cst_32 : f32 to vector<8x128xf32>
    %106 = arith.subf %105, %98 : vector<8x128xf32>
    %107 = arith.mulf %106, %104 : vector<8x128xf32>
    %108 = arith.mulf %98, %76 : vector<8x128xf32>
    %109 = arith.addf %107, %108 : vector<8x128xf32>
    %c3_i32 = arith.constant 3 : i32
    %c8_i32_33 = arith.constant 8 : i32
    %110 = arith.muli %c3_i32, %c8_i32_33 : i32
    %111 = tpu.assume_multiple %110, 8 : i32
    %112 = arith.index_cast %111 : i32 to index
    %c0_34 = arith.constant 0 : index
    %113 = vector.load %arg8[%112, %c0_34] : memref<64x384xf32, #tpu.memory_space<vmem>>, vector<8x384xf32>
    %c0_35 = arith.constant 0 : index
    %c0_36 = arith.constant 0 : index
    %114 = vector.load %arg3[%c0_35, %c0_36] : memref<128x384xf32, #tpu.memory_space<vmem>>, vector<128x384xf32>
    %cst_37 = arith.constant dense<0.000000e+00> : vector<8x384xf32>
    %115 = tpu.matmul %109, %114, %cst_37 {dimension_numbers = #tpu.dot_dimension_numbers<[1], [0], [0], [1], [0, 0, 1, 1], [], []>} : vector<8x128xf32>, vector<128x384xf32>, vector<8x384xf32> -> vector<8x384xf32>
    %116 = vector.extract_strided_slice %113 {offsets = [0, 0], sizes = [8, 128], strides = [1, 1]} : vector<8x384xf32> to vector<8x128xf32>
    %117 = vector.extract_strided_slice %115 {offsets = [0, 0], sizes = [8, 128], strides = [1, 1]} : vector<8x384xf32> to vector<8x128xf32>
    %118 = arith.addf %116, %117 : vector<8x128xf32>
    %119 = arith.negf %118 : vector<8x128xf32>
    %120 = math.exp %119 : vector<8x128xf32>
    %cst_38 = arith.constant 1.000000e+00 : f32
    %121 = vector.broadcast %cst_38 : f32 to vector<8x128xf32>
    %122 = arith.addf %121, %120 : vector<8x128xf32>
    %123 = arith.divf %121, %122 : vector<8x128xf32>
    %124 = vector.extract_strided_slice %113 {offsets = [0, 128], sizes = [8, 128], strides = [1, 1]} : vector<8x384xf32> to vector<8x128xf32>
    %125 = vector.extract_strided_slice %115 {offsets = [0, 128], sizes = [8, 128], strides = [1, 1]} : vector<8x384xf32> to vector<8x128xf32>
    %126 = arith.addf %124, %125 : vector<8x128xf32>
    %127 = arith.negf %126 : vector<8x128xf32>
    %128 = math.exp %127 : vector<8x128xf32>
    %cst_39 = arith.constant 1.000000e+00 : f32
    %129 = vector.broadcast %cst_39 : f32 to vector<8x128xf32>
    %130 = arith.addf %129, %128 : vector<8x128xf32>
    %131 = arith.divf %129, %130 : vector<8x128xf32>
    %132 = vector.extract_strided_slice %113 {offsets = [0, 256], sizes = [8, 128], strides = [1, 1]} : vector<8x384xf32> to vector<8x128xf32>
    %133 = vector.extract_strided_slice %115 {offsets = [0, 256], sizes = [8, 128], strides = [1, 1]} : vector<8x384xf32> to vector<8x128xf32>
    %134 = arith.addf %133, %9 : vector<8x128xf32>
    %135 = arith.mulf %123, %134 : vector<8x128xf32>
    %136 = arith.addf %132, %135 : vector<8x128xf32>
    %137 = math.tanh %136 : vector<8x128xf32>
    %cst_40 = arith.constant 1.000000e+00 : f32
    %138 = vector.broadcast %cst_40 : f32 to vector<8x128xf32>
    %139 = arith.subf %138, %131 : vector<8x128xf32>
    %140 = arith.mulf %139, %137 : vector<8x128xf32>
    %141 = arith.mulf %131, %109 : vector<8x128xf32>
    %142 = arith.addf %140, %141 : vector<8x128xf32>
    %c4_i32 = arith.constant 4 : i32
    %c8_i32_41 = arith.constant 8 : i32
    %143 = arith.muli %c4_i32, %c8_i32_41 : i32
    %144 = tpu.assume_multiple %143, 8 : i32
    %145 = arith.index_cast %144 : i32 to index
    %c0_42 = arith.constant 0 : index
    %146 = vector.load %arg8[%145, %c0_42] : memref<64x384xf32, #tpu.memory_space<vmem>>, vector<8x384xf32>
    %c0_43 = arith.constant 0 : index
    %c0_44 = arith.constant 0 : index
    %147 = vector.load %arg3[%c0_43, %c0_44] : memref<128x384xf32, #tpu.memory_space<vmem>>, vector<128x384xf32>
    %cst_45 = arith.constant dense<0.000000e+00> : vector<8x384xf32>
    %148 = tpu.matmul %142, %147, %cst_45 {dimension_numbers = #tpu.dot_dimension_numbers<[1], [0], [0], [1], [0, 0, 1, 1], [], []>} : vector<8x128xf32>, vector<128x384xf32>, vector<8x384xf32> -> vector<8x384xf32>
    %149 = vector.extract_strided_slice %146 {offsets = [0, 0], sizes = [8, 128], strides = [1, 1]} : vector<8x384xf32> to vector<8x128xf32>
    %150 = vector.extract_strided_slice %148 {offsets = [0, 0], sizes = [8, 128], strides = [1, 1]} : vector<8x384xf32> to vector<8x128xf32>
    %151 = arith.addf %149, %150 : vector<8x128xf32>
    %152 = arith.negf %151 : vector<8x128xf32>
    %153 = math.exp %152 : vector<8x128xf32>
    %cst_46 = arith.constant 1.000000e+00 : f32
    %154 = vector.broadcast %cst_46 : f32 to vector<8x128xf32>
    %155 = arith.addf %154, %153 : vector<8x128xf32>
    %156 = arith.divf %154, %155 : vector<8x128xf32>
    %157 = vector.extract_strided_slice %146 {offsets = [0, 128], sizes = [8, 128], strides = [1, 1]} : vector<8x384xf32> to vector<8x128xf32>
    %158 = vector.extract_strided_slice %148 {offsets = [0, 128], sizes = [8, 128], strides = [1, 1]} : vector<8x384xf32> to vector<8x128xf32>
    %159 = arith.addf %157, %158 : vector<8x128xf32>
    %160 = arith.negf %159 : vector<8x128xf32>
    %161 = math.exp %160 : vector<8x128xf32>
    %cst_47 = arith.constant 1.000000e+00 : f32
    %162 = vector.broadcast %cst_47 : f32 to vector<8x128xf32>
    %163 = arith.addf %162, %161 : vector<8x128xf32>
    %164 = arith.divf %162, %163 : vector<8x128xf32>
    %165 = vector.extract_strided_slice %146 {offsets = [0, 256], sizes = [8, 128], strides = [1, 1]} : vector<8x384xf32> to vector<8x128xf32>
    %166 = vector.extract_strided_slice %148 {offsets = [0, 256], sizes = [8, 128], strides = [1, 1]} : vector<8x384xf32> to vector<8x128xf32>
    %167 = arith.addf %166, %9 : vector<8x128xf32>
    %168 = arith.mulf %156, %167 : vector<8x128xf32>
    %169 = arith.addf %165, %168 : vector<8x128xf32>
    %170 = math.tanh %169 : vector<8x128xf32>
    %cst_48 = arith.constant 1.000000e+00 : f32
    %171 = vector.broadcast %cst_48 : f32 to vector<8x128xf32>
    %172 = arith.subf %171, %164 : vector<8x128xf32>
    %173 = arith.mulf %172, %170 : vector<8x128xf32>
    %174 = arith.mulf %164, %142 : vector<8x128xf32>
    %175 = arith.addf %173, %174 : vector<8x128xf32>
    %c5_i32 = arith.constant 5 : i32
    %c8_i32_49 = arith.constant 8 : i32
    %176 = arith.muli %c5_i32, %c8_i32_49 : i32
    %177 = tpu.assume_multiple %176, 8 : i32
    %178 = arith.index_cast %177 : i32 to index
    %c0_50 = arith.constant 0 : index
    %179 = vector.load %arg8[%178, %c0_50] : memref<64x384xf32, #tpu.memory_space<vmem>>, vector<8x384xf32>
    %c0_51 = arith.constant 0 : index
    %c0_52 = arith.constant 0 : index
    %180 = vector.load %arg3[%c0_51, %c0_52] : memref<128x384xf32, #tpu.memory_space<vmem>>, vector<128x384xf32>
    %cst_53 = arith.constant dense<0.000000e+00> : vector<8x384xf32>
    %181 = tpu.matmul %175, %180, %cst_53 {dimension_numbers = #tpu.dot_dimension_numbers<[1], [0], [0], [1], [0, 0, 1, 1], [], []>} : vector<8x128xf32>, vector<128x384xf32>, vector<8x384xf32> -> vector<8x384xf32>
    %182 = vector.extract_strided_slice %179 {offsets = [0, 0], sizes = [8, 128], strides = [1, 1]} : vector<8x384xf32> to vector<8x128xf32>
    %183 = vector.extract_strided_slice %181 {offsets = [0, 0], sizes = [8, 128], strides = [1, 1]} : vector<8x384xf32> to vector<8x128xf32>
    %184 = arith.addf %182, %183 : vector<8x128xf32>
    %185 = arith.negf %184 : vector<8x128xf32>
    %186 = math.exp %185 : vector<8x128xf32>
    %cst_54 = arith.constant 1.000000e+00 : f32
    %187 = vector.broadcast %cst_54 : f32 to vector<8x128xf32>
    %188 = arith.addf %187, %186 : vector<8x128xf32>
    %189 = arith.divf %187, %188 : vector<8x128xf32>
    %190 = vector.extract_strided_slice %179 {offsets = [0, 128], sizes = [8, 128], strides = [1, 1]} : vector<8x384xf32> to vector<8x128xf32>
    %191 = vector.extract_strided_slice %181 {offsets = [0, 128], sizes = [8, 128], strides = [1, 1]} : vector<8x384xf32> to vector<8x128xf32>
    %192 = arith.addf %190, %191 : vector<8x128xf32>
    %193 = arith.negf %192 : vector<8x128xf32>
    %194 = math.exp %193 : vector<8x128xf32>
    %cst_55 = arith.constant 1.000000e+00 : f32
    %195 = vector.broadcast %cst_55 : f32 to vector<8x128xf32>
    %196 = arith.addf %195, %194 : vector<8x128xf32>
    %197 = arith.divf %195, %196 : vector<8x128xf32>
    %198 = vector.extract_strided_slice %179 {offsets = [0, 256], sizes = [8, 128], strides = [1, 1]} : vector<8x384xf32> to vector<8x128xf32>
    %199 = vector.extract_strided_slice %181 {offsets = [0, 256], sizes = [8, 128], strides = [1, 1]} : vector<8x384xf32> to vector<8x128xf32>
    %200 = arith.addf %199, %9 : vector<8x128xf32>
    %201 = arith.mulf %189, %200 : vector<8x128xf32>
    %202 = arith.addf %198, %201 : vector<8x128xf32>
    %203 = math.tanh %202 : vector<8x128xf32>
    %cst_56 = arith.constant 1.000000e+00 : f32
    %204 = vector.broadcast %cst_56 : f32 to vector<8x128xf32>
    %205 = arith.subf %204, %197 : vector<8x128xf32>
    %206 = arith.mulf %205, %203 : vector<8x128xf32>
    %207 = arith.mulf %197, %175 : vector<8x128xf32>
    %208 = arith.addf %206, %207 : vector<8x128xf32>
    %c6_i32 = arith.constant 6 : i32
    %c8_i32_57 = arith.constant 8 : i32
    %209 = arith.muli %c6_i32, %c8_i32_57 : i32
    %210 = tpu.assume_multiple %209, 8 : i32
    %211 = arith.index_cast %210 : i32 to index
    %c0_58 = arith.constant 0 : index
    %212 = vector.load %arg8[%211, %c0_58] : memref<64x384xf32, #tpu.memory_space<vmem>>, vector<8x384xf32>
    %c0_59 = arith.constant 0 : index
    %c0_60 = arith.constant 0 : index
    %213 = vector.load %arg3[%c0_59, %c0_60] : memref<128x384xf32, #tpu.memory_space<vmem>>, vector<128x384xf32>
    %cst_61 = arith.constant dense<0.000000e+00> : vector<8x384xf32>
    %214 = tpu.matmul %208, %213, %cst_61 {dimension_numbers = #tpu.dot_dimension_numbers<[1], [0], [0], [1], [0, 0, 1, 1], [], []>} : vector<8x128xf32>, vector<128x384xf32>, vector<8x384xf32> -> vector<8x384xf32>
    %215 = vector.extract_strided_slice %212 {offsets = [0, 0], sizes = [8, 128], strides = [1, 1]} : vector<8x384xf32> to vector<8x128xf32>
    %216 = vector.extract_strided_slice %214 {offsets = [0, 0], sizes = [8, 128], strides = [1, 1]} : vector<8x384xf32> to vector<8x128xf32>
    %217 = arith.addf %215, %216 : vector<8x128xf32>
    %218 = arith.negf %217 : vector<8x128xf32>
    %219 = math.exp %218 : vector<8x128xf32>
    %cst_62 = arith.constant 1.000000e+00 : f32
    %220 = vector.broadcast %cst_62 : f32 to vector<8x128xf32>
    %221 = arith.addf %220, %219 : vector<8x128xf32>
    %222 = arith.divf %220, %221 : vector<8x128xf32>
    %223 = vector.extract_strided_slice %212 {offsets = [0, 128], sizes = [8, 128], strides = [1, 1]} : vector<8x384xf32> to vector<8x128xf32>
    %224 = vector.extract_strided_slice %214 {offsets = [0, 128], sizes = [8, 128], strides = [1, 1]} : vector<8x384xf32> to vector<8x128xf32>
    %225 = arith.addf %223, %224 : vector<8x128xf32>
    %226 = arith.negf %225 : vector<8x128xf32>
    %227 = math.exp %226 : vector<8x128xf32>
    %cst_63 = arith.constant 1.000000e+00 : f32
    %228 = vector.broadcast %cst_63 : f32 to vector<8x128xf32>
    %229 = arith.addf %228, %227 : vector<8x128xf32>
    %230 = arith.divf %228, %229 : vector<8x128xf32>
    %231 = vector.extract_strided_slice %212 {offsets = [0, 256], sizes = [8, 128], strides = [1, 1]} : vector<8x384xf32> to vector<8x128xf32>
    %232 = vector.extract_strided_slice %214 {offsets = [0, 256], sizes = [8, 128], strides = [1, 1]} : vector<8x384xf32> to vector<8x128xf32>
    %233 = arith.addf %232, %9 : vector<8x128xf32>
    %234 = arith.mulf %222, %233 : vector<8x128xf32>
    %235 = arith.addf %231, %234 : vector<8x128xf32>
    %236 = math.tanh %235 : vector<8x128xf32>
    %cst_64 = arith.constant 1.000000e+00 : f32
    %237 = vector.broadcast %cst_64 : f32 to vector<8x128xf32>
    %238 = arith.subf %237, %230 : vector<8x128xf32>
    %239 = arith.mulf %238, %236 : vector<8x128xf32>
    %240 = arith.mulf %230, %208 : vector<8x128xf32>
    %241 = arith.addf %239, %240 : vector<8x128xf32>
    %c7_i32 = arith.constant 7 : i32
    %c8_i32_65 = arith.constant 8 : i32
    %242 = arith.muli %c7_i32, %c8_i32_65 : i32
    %243 = tpu.assume_multiple %242, 8 : i32
    %244 = arith.index_cast %243 : i32 to index
    %c0_66 = arith.constant 0 : index
    %245 = vector.load %arg8[%244, %c0_66] : memref<64x384xf32, #tpu.memory_space<vmem>>, vector<8x384xf32>
    %c0_67 = arith.constant 0 : index
    %c0_68 = arith.constant 0 : index
    %246 = vector.load %arg3[%c0_67, %c0_68] : memref<128x384xf32, #tpu.memory_space<vmem>>, vector<128x384xf32>
    %cst_69 = arith.constant dense<0.000000e+00> : vector<8x384xf32>
    %247 = tpu.matmul %241, %246, %cst_69 {dimension_numbers = #tpu.dot_dimension_numbers<[1], [0], [0], [1], [0, 0, 1, 1], [], []>} : vector<8x128xf32>, vector<128x384xf32>, vector<8x384xf32> -> vector<8x384xf32>
    %248 = vector.extract_strided_slice %245 {offsets = [0, 0], sizes = [8, 128], strides = [1, 1]} : vector<8x384xf32> to vector<8x128xf32>
    %249 = vector.extract_strided_slice %247 {offsets = [0, 0], sizes = [8, 128], strides = [1, 1]} : vector<8x384xf32> to vector<8x128xf32>
    %250 = arith.addf %248, %249 : vector<8x128xf32>
    %251 = arith.negf %250 : vector<8x128xf32>
    %252 = math.exp %251 : vector<8x128xf32>
    %cst_70 = arith.constant 1.000000e+00 : f32
    %253 = vector.broadcast %cst_70 : f32 to vector<8x128xf32>
    %254 = arith.addf %253, %252 : vector<8x128xf32>
    %255 = arith.divf %253, %254 : vector<8x128xf32>
    %256 = vector.extract_strided_slice %245 {offsets = [0, 128], sizes = [8, 128], strides = [1, 1]} : vector<8x384xf32> to vector<8x128xf32>
    %257 = vector.extract_strided_slice %247 {offsets = [0, 128], sizes = [8, 128], strides = [1, 1]} : vector<8x384xf32> to vector<8x128xf32>
    %258 = arith.addf %256, %257 : vector<8x128xf32>
    %259 = arith.negf %258 : vector<8x128xf32>
    %260 = math.exp %259 : vector<8x128xf32>
    %cst_71 = arith.constant 1.000000e+00 : f32
    %261 = vector.broadcast %cst_71 : f32 to vector<8x128xf32>
    %262 = arith.addf %261, %260 : vector<8x128xf32>
    %263 = arith.divf %261, %262 : vector<8x128xf32>
    %264 = vector.extract_strided_slice %245 {offsets = [0, 256], sizes = [8, 128], strides = [1, 1]} : vector<8x384xf32> to vector<8x128xf32>
    %265 = vector.extract_strided_slice %247 {offsets = [0, 256], sizes = [8, 128], strides = [1, 1]} : vector<8x384xf32> to vector<8x128xf32>
    %266 = arith.addf %265, %9 : vector<8x128xf32>
    %267 = arith.mulf %255, %266 : vector<8x128xf32>
    %268 = arith.addf %264, %267 : vector<8x128xf32>
    %269 = math.tanh %268 : vector<8x128xf32>
    %cst_72 = arith.constant 1.000000e+00 : f32
    %270 = vector.broadcast %cst_72 : f32 to vector<8x128xf32>
    %271 = arith.subf %270, %263 : vector<8x128xf32>
    %272 = arith.mulf %271, %269 : vector<8x128xf32>
    %273 = arith.mulf %263, %241 : vector<8x128xf32>
    %274 = arith.addf %272, %273 : vector<8x128xf32>
    %c8_i32_73 = arith.constant 8 : i32
    %c0_74 = arith.constant 0 : index
    %c0_75 = arith.constant 0 : index
    %275 = vector.load %arg5[%c0_74, %c0_75] : memref<128x128xf32, #tpu.memory_space<vmem>>, vector<128x128xf32>
    %cst_76 = arith.constant dense<0.000000e+00> : vector<8x128xf32>
    %276 = tpu.matmul %274, %275, %cst_76 {dimension_numbers = #tpu.dot_dimension_numbers<[1], [0], [0], [1], [0, 0, 1, 1], [], []>} : vector<8x128xf32>, vector<128x128xf32>, vector<8x128xf32> -> vector<8x128xf32>
    %c0_77 = arith.constant 0 : index
    %c0_78 = arith.constant 0 : index
    %277 = vector.load %arg6[%c0_77, %c0_78] : memref<1x128xf32, #tpu.memory_space<vmem>>, vector<1x128xf32>
    %278 = vector.broadcast %277 : vector<1x128xf32> to vector<8x128xf32>
    %279 = arith.addf %276, %278 : vector<8x128xf32>
    %c0_79 = arith.constant 0 : index
    %c0_80 = arith.constant 0 : index
    %280 = vector.load %arg7[%c0_79, %c0_80] : memref<8x128xf32, #tpu.memory_space<vmem>>, vector<8x128xf32>
    tpu.vector_store %arg7[%c0_79, %c0_80], %279 {strides = array<i32>} : memref<8x128xf32, #tpu.memory_space<vmem>>, vector<8x128xf32>,
    return
  }
}

</mosaic_0001>

<bundles_post_ra>
// kernel: bigru_forward.1
= control target key start
LH: loop header
LB: loop body
LE: loop exit
PB: predicated region body
PF: predicated region fallthrough
CT: control target
= control target key end

     0   :  { %v2945_v2 = vmov 0.0   ;;  %vm54_vm0 = vcmask 64512   ;;  %v2946_v40 = vmov 0.0|0.0   ;;  %vm2947_vm1 = vmmov 0   ;;  %s3645_s1 = inlined_call_operand.vmem [shape: f32[8,384], index: 1, kind: input, shape index: {}]   ;;  %s3646_s0 = inlined_call_operand.vmem [shape: f32[64,8], index: 0, kind: input, shape index: {}]   ;;  %s3647_s3 = inlined_call_operand.vmem [shape: f32[128,384], index: 3, kind: input, shape index: {}]   ;;  %s3648_s2 = inlined_call_operand.vmem [shape: f32[1,384], index: 2, kind: input, shape index: {}]   ;;  %s3649_s4 = inlined_call_operand.vmem [shape: f32[1,128], index: 4, kind: input, shape index: {}]   ;;  %s3650_s5 = inlined_call_operand.vmem [shape: f32[128,128], index: 5, kind: input, shape index: {}]   ;;  %s3651_s6 = inlined_call_operand.vmem [shape: f32[1,128], index: 6, kind: input, shape index: {}]   ;;  %s3652_s7 = inlined_call_operand.vmem [shape: f32[8,128], index: 7, kind: output, shape index: {}]  }
   0x1   :  { %v35_v0 = vld [vmem:[%s3645_s1 + $0x8] sm:$0xff]  ;;  %v34_v1 = vld [vmem:[%s3645_s1] sm:$0xff]  ;;  %143 = vmatprep.mubr.f32.mxu0 %v2945_v2  ;;  %v337_v8 = vld [vmem:[%s3647_s3 + $0x18] sm:$0xff] }
   0x2   :  { %v26_v3 = vld [vmem:[%s3646_s0] sm:$0xff]  ;;  %79 = vmatprep.subr.mxu0 %v35_v0  ;;  %v335_v4 = vld [vmem:[%s3647_s3 + $0x8] sm:$0xff]  ;;  %v341_v9 = vld [vmem:[%s3647_s3 + $0x38] sm:$0xff] }
   0x3   :  { %v338_v5 = vld [vmem:[%s3647_s3 + $0x20] sm:$0xff]  ;;  %2031 = vmatprep.mubr.msk.f32.mxu1 %vm54_vm0, %v26_v3  ;;  %80 = vmatpush1.msra.mxu0 %v34_v1  ;;  %v344_v11 = vld [vmem:[%s3647_s3 + $0x50] sm:$0xff]  ;;  %v343_v13 = vld [vmem:[%s3647_s3 + $0x48] sm:$0xff] }
   0x4   :  { %v334_v6 = vld [vmem:[%s3647_s3] sm:$0xff]  ;;  %v3008_v7 = vpack.c.bf16 %v338_v5, %v335_v4  ;;  %1833 = vmatmul.mubr.msk.f32.vlgmr.msra.gmra.mrb[0].mxu0 %vm54_vm0, %v26_v3  ;;  %v340_v12 = vld [vmem:[%s3647_s3 + $0x30] sm:$0xff]  ;;  %v27_v14 = vld [vmem:[%s3646_s0 + $0x8] sm:$0xff]  ;;  %v3033_v15 = vpack.c.bf16 %v344_v11, %v341_v9 }
   0x5   :  { %v3017_v10 = vpack.c.bf16 %v337_v8, %v334_v6  ;;  %149 = vmatprep.mubr.f32.mxu0 %v2945_v2  ;;  %v347_v16 = vld [vmem:[%s3647_s3 + $0x68] sm:$0xff]  ;;  %v350_v17 = vld [vmem:[%s3647_s3 + $0x80] sm:$0xff]  ;;  %v3042_v18 = vpack.c.bf16 %v343_v13, %v340_v12  ;;  %v349_v21 = vld [vmem:[%s3647_s3 + $0x78] sm:$0xff] }
   0x6   :  { %2359 = vmatprep.subr.bf16.mxu0 %v3008_v7  ;;  %v3045_v19 = vpack.c.bf16 %v350_v17, %v347_v16  ;;  %v346_v20 = vld [vmem:[%s3647_s3 + $0x60] sm:$0xff]  ;;  %v353_v22 = vld [vmem:[%s3647_s3 + $0x98] sm:$0xff]  ;;  %v356_v23 = vld [vmem:[%s3647_s3 + $0xb0] sm:$0xff] }
   0x7   :  { %2361 = vmatpush1.bf16.msra.mxu0 %v3017_v10  ;;  %v28_v24 = vld [vmem:[%s3646_s0 + $0x10] sm:$0xff]  ;;  %v3065_v25 = vpack.c.bf16 %v349_v21, %v346_v20  ;;  %v3068_v26 = vpack.c.bf16 %v356_v23, %v353_v22  ;;  %v355_v28 = vld [vmem:[%s3647_s3 + $0xa8] sm:$0xff]  ;;  %v362_v30 = vld [vmem:[%s3647_s3 + $0xe0] sm:$0xff] }
   0x8   :  { %2363 = vmatprep.subr.bf16.mxu0 %v3033_v15  ;;  %1834 = vmatmul.mubr.msk.f32.gmra.mrb[2].mxu0 %vm54_vm0, %v27_v14  ;;  %v352_v27 = vld [vmem:[%s3647_s3 + $0x90] sm:$0xff]  ;;  %v359_v29 = vld [vmem:[%s3647_s3 + $0xc8] sm:$0xff]  ;;  %v29_v32 = vld [vmem:[%s3646_s0 + $0x18] sm:$0xff] }
   0x9   :  { %155 = vmatprep.mubr.f32.mxu0 %v2945_v2  ;;  %v36_v31 = vld [vmem:[%s3645_s1 + $0x10] sm:$0xff]  ;;  %v3094_v34 = vpack.c.bf16 %v355_v28, %v352_v27  ;;  %v339_v35 = vld [vmem:[%s3647_s3 + $0x28] sm:$0xff]  ;;  %v3100_v36 = vpack.c.bf16 %v362_v30, %v359_v29  ;;  %v358_v37 = vld [vmem:[%s3647_s3 + $0xc0] sm:$0xff]  ;;  %v39_v29 = vlaneseq }
   0xa   :  { %2029 = vmatprep.subr.mxu1 %v36_v31  ;;  %v336_v33 = vld [vmem:[%s3647_s3 + $0x10] sm:$0xff]  ;;  %v361_v38 = vld [vmem:[%s3647_s3 + $0xd8] sm:$0xff]  ;;  %v342_v43 = vld [vmem:[%s3647_s3 + $0x40] sm:$0xff] }
   0xb   :  { %2365 = vmatpush1.bf16.msra.mxu0 %v3042_v18  ;;  %2030 = vmatpush3.msra.mxu1 %v36_v31  ;;  %v365_v39 = vld [vmem:[%s3647_s3 + $0xf8] sm:$0xff]  ;;  %v3112_v41 = vpack.c.bf16 %v339_v35, %v336_v33  ;;  %v368_v42 = vld [vmem:[%s3647_s3 + $0x110] sm:$0xff]  ;;  %v30_v45 = vld [vmem:[%s3646_s0 + $0x20] sm:$0xff]  ;;  %v3133_v47 = vpack.c.bf16 %v361_v38, %v358_v37  ;;  %v40_v30 = vshrl.u32 %v39_v29, 7 }
   0xc   :  { %2367 = vmatprep.subr.bf16.mxu0 %v3045_v19  ;;  %1835 = vmatmul.mubr.msk.f32.gmra.mrb[4].mxu0 %vm54_vm0, %v28_v24  ;;  %v345_v44 = vld [vmem:[%s3647_s3 + $0x58] sm:$0xff]  ;;  %v348_v48 = vld [vmem:[%s3647_s3 + $0x70] sm:$0xff]  ;;  %v351_v49 = vld [vmem:[%s3647_s3 + $0x88] sm:$0xff]  ;;  %v3143_v50 = vpack.c.bf16 %v368_v42, %v365_v39 }
   0xd   :  { %161 = vmatprep.mubr.f32.mxu0 %v2945_v2  ;;  %2390 = vmatprep.subr.bf16.mxu1 %v2946_v40  ;;  %v3130_v46 = vpack.c.bf16 %v345_v44, %v342_v43  ;;  %v364_v51 = vld [vmem:[%s3647_s3 + $0xf0] sm:$0xff]  ;;  %v367_v52 = vld [vmem:[%s3647_s3 + $0x108] sm:$0xff]  ;;  %v374_v54 = vld [vmem:[%s3647_s3 + $0x140] sm:$0xff]  ;;  %v3165_v56 = vpack.c.bf16 %v351_v49, %v348_v48  ;;  %v49_v31 = vsub.s32 2, %v40_v30 }
   0xe   :  { %2032 = vmatmul.mubr.msk.f32.vlgmr.msra.gmra.mrb[0].mxu1 %vm54_vm0, %v27_v14  ;;  %v371_v53 = vld [vmem:[%s3647_s3 + $0x128] sm:$0xff]  ;;  %v3168_v57 = vpack.c.bf16 %v367_v52, %v364_v51  ;;  %v354_v58 = vld [vmem:[%s3647_s3 + $0xa0] sm:$0xff]  ;;  %v357_v59 = vld [vmem:[%s3647_s3 + $0xb8] sm:$0xff] }
   0xf   :  { %2369 = vmatpush1.bf16.msra.mxu0 %v3065_v25  ;;  %2392 = vmatpush3.bf16.msra.mxu1 %v3112_v41  ;;  %v31_v55 = vld [vmem:[%s3646_s0 + $0x28] sm:$0xff]  ;;  %v3178_v60 = vpack.c.bf16 %v374_v54, %v371_v53  ;;  %v370_v61 = vld [vmem:[%s3647_s3 + $0x120] sm:$0xff]  ;;  %v373_v62 = vld [vmem:[%s3647_s3 + $0x138] sm:$0xff]  ;;  %v3200_v3 = vpack.c.bf16 %v357_v59, %v354_v58  ;;  %v45_v59 = vsub.s32 1, %v40_v30 }
  0x10   :  { %2371 = vmatprep.subr.bf16.mxu0 %v3068_v26  ;;  %1836 = vmatmul.mubr.msk.f32.gmra.mrb[6].mxu0 %vm54_vm0, %v29_v32  ;;  %v377_v63 = vld [vmem:[%s3647_s3 + $0x158] sm:$0xff]  ;;  %v380_v0 = vld [vmem:[%s3647_s3 + $0x170] sm:$0xff]  ;;  %v3203_v4 = vpack.c.bf16 %v373_v62, %v370_v61  ;;  %v363_v6 = vld [vmem:[%s3647_s3 + $0xe8] sm:$0xff] }
  0x11   :  { %167 = vmatprep.mubr.f32.mxu0 %v2945_v2  ;;  %2393 = vmatprep.subr.bf16.mxu1 %v2946_v40  ;;  %v32_v1 = vld [vmem:[%s3646_s0 + $0x30] sm:$0xff]  ;;  %v33_v8 = vld [vmem:[%s3646_s0 + $0x38] sm:$0xff]  ;;  %v3216_v9 = vpack.c.bf16 %v380_v0, %v377_v63  ;;  %v379_v12 = vld [vmem:[%s3647_s3 + $0x168] sm:$0xff] }
  0x12   :  { %2034 = vmatprep.mubr.msk.f32.mxu1 %vm54_vm0, %v28_v24  ;;  %v360_v5 = vld [vmem:[%s3647_s3 + $0xd0] sm:$0xff]  ;;  %v366_v16 = vld [vmem:[%s3647_s3 + $0x100] sm:$0xff]  ;;  %v369_v17 = vld [vmem:[%s3647_s3 + $0x118] sm:$0xff] }
  0x13   :  { %2373 = vmatpush1.bf16.msra.mxu0 %v3094_v34  ;;  %2035 = vmatmul.mubr.msk.f32.gmra.mrb[2].mxu1 %vm54_vm0, %v29_v32  ;;  %v376_v11 = vld [vmem:[%s3647_s3 + $0x150] sm:$0xff]  ;;  %v3229_v13 = vpack.c.bf16 %v363_v6, %v360_v5  ;;  %v3247_v20 = vpack.c.bf16 %v369_v17, %v366_v16  ;;  %v375_v22 = vld [vmem:[%s3647_s3 + $0x148] sm:$0xff]  ;;  %v378_v24 = vld [vmem:[%s3647_s3 + $0x160] sm:$0xff] }
  0x14   :  { %2375 = vmatprep.subr.bf16.mxu0 %v3100_v36  ;;  %1837 = vmatmul.mubr.msk.f32.gmra.mrb[8].mxu0 %vm54_vm0, %v30_v45  ;;  %v3232_v14 = vpack.c.bf16 %v379_v12, %v376_v11  ;;  %v372_v21 = vld [vmem:[%s3647_s3 + $0x130] sm:$0xff]  ;;  %v381_v27 = vld [vmem:[%s3647_s3 + $0x178] sm:$0xff]  ;;  %v37_v32 = vld [vmem:[%s3648_s2] sm:$0x7] }
  0x15   :  { %173 = vmatprep.mubr.f32.mxu0 %v2945_v2  ;;  %2395 = vmatpush3.bf16.msra.mxu1 %v3130_v46  ;;  %v3260_v23 = vpack.c.bf16 %v375_v22, %v372_v21  ;;  %v3273_v28 = vpack.c.bf16 %v381_v27, %v378_v24  ;;  %v50_v33 = vrot.slane %v37_v32, %v49_v31  ;;  %v3337_v22 = vld [vmem:[%s3649_s4] ss:$0 sm:$0xff] }
  0x16   :  { %2396 = vmatprep.subr.bf16.mxu1 %v2946_v40  ;;  %2037 = vmatprep.mubr.msk.f32.mxu1 %vm54_vm0, %v30_v45  ;;  %v3330_v63 = vrot.slane %v37_v32, %v45_v59 }
  0x17   :  { %2377 = vmatpush1.bf16.msra.mxu0 %v3133_v47  ;;  %2038 = vmatmul.mubr.msk.f32.gmra.mrb[4].mxu1 %vm54_vm0, %v31_v55 }
  0x18   :  { %2379 = vmatprep.subr.bf16.mxu0 %v3143_v50  ;;  %1838 = vmatmul.mubr.msk.f32.gmra.mrb[10].mxu0 %vm54_vm0, %v31_v55  ;;  %v41_v55 = vsub.s32 0, %v40_v30 }
  0x19   :  { %179 = vmatprep.mubr.f32.mxu0 %v2945_v2  ;;  %2398 = vmatpush3.bf16.msra.mxu1 %v3165_v56 }
  0x1a   :  { %2399 = vmatprep.subr.bf16.mxu1 %v2946_v40  ;;  %2040 = vmatprep.mubr.msk.f32.mxu1 %vm54_vm0, %v32_v1  ;;  %v3328_v61 = vrot.slane %v37_v32, %v41_v55 }
  0x1b   :  { %2381 = vmatpush1.bf16.msra.mxu0 %v3168_v57  ;;  %2041 = vmatmul.mubr.msk.f32.gmra.mrb[6].mxu1 %vm54_vm0, %v33_v8 }
  0x1c   :  { %2383 = vmatprep.subr.bf16.mxu0 %v3178_v60  ;;  %1839 = vmatmul.mubr.msk.f32.gmra.mrb[12].mxu0 %vm54_vm0, %v32_v1 }
  0x1d   :  { %185 = vmatprep.mubr.f32.mxu0 %v2945_v2  ;;  %2401 = vmatpush3.bf16.msra.mxu1 %v3200_v3 }
  0x1e   :  { %2402 = vmatprep.subr.bf16.mxu1 %v2946_v40  ;;  %2075 = vmatprep.mubr.msk.f32.mxu1 %vm2947_vm1, %v2945_v2 }
  0x1f   :  { %2385 = vmatpush1.bf16.msra.mxu0 %v3203_v4 }
  0x20   :  { %2387 = vmatprep.subr.bf16.mxu0 %v3216_v9  ;;  %1840 = vmatmul.mubr.msk.f32.gmra.mrb[14].mxu0 %vm54_vm0, %v33_v8 }
  0x21   :  { %446 = vmatprep.mubr.f32.mxu0 %v2945_v2  ;;  %2404 = vmatpush3.bf16.msra.mxu1 %v3229_v13 }
  0x22   :  { %2405 = vmatprep.subr.bf16.mxu1 %v2946_v40 }
  0x23   :  { %2389 = vmatpush1.bf16.msra.mxu0 %v3232_v14 }
  0x24   :  { %2415 = vmatprep.subr.bf16.mxu0 %v3008_v7 }
  0x25   :  { %2407 = vmatpush3.bf16.msra.mxu1 %v3247_v20 }
  0x26   :  { %447 = vmatmul.mubr.f32.vlgmr.msra.gmra.mrb[0].mxu0 %v2945_v2  ;;  %2408 = vmatprep.subr.bf16.mxu1 %v2946_v40 }
  0x27   :  { %2417 = vmatpush1.bf16.msra.mxu0 %v3017_v10  ;;  %615 = vmatprep.mubr.f32.mxu0 %v2945_v2 }
  0x28   :  { %2419 = vmatprep.subr.bf16.mxu0 %v3033_v15 }
  0x29   :  { %2410 = vmatpush3.bf16.msra.mxu1 %v3260_v23 }
  0x2a   :  { %2411 = vmatprep.subr.bf16.mxu1 %v2946_v40 }
  0x2b   :  { %2421 = vmatpush1.bf16.msra.mxu0 %v3042_v18 }
  0x2c   :  { %2423 = vmatprep.subr.bf16.mxu0 %v3045_v19 }
  0x2d   :  { %2413 = vmatpush3.bf16.msra.mxu1 %v3273_v28 }
  0x2e   :  { %2446 = vmatprep.subr.bf16.mxu1 %v2946_v40 }
  0x2f   :  { %2425 = vmatpush1.bf16.msra.mxu0 %v3065_v25 }
  0x30   :  { %2427 = vmatprep.subr.bf16.mxu0 %v3068_v26  ;;  %2076 = vmatmul.mubr.f32.vlgmr.msra.gmra.mrb[8].mxu1 %v2945_v2 }
  0x31   :  { %2448 = vmatpush3.bf16.msra.mxu1 %v3112_v41  ;;  %2110 = vmatprep.mubr.msk.f32.mxu1 %vm2947_vm1, %v2945_v2 }
  0x32   :  { %2449 = vmatprep.subr.bf16.mxu1 %v2946_v40 }
  0x33   :  { %2429 = vmatpush1.bf16.msra.mxu0 %v3094_v34 }
  0x34   :  { %2431 = vmatprep.subr.bf16.mxu0 %v3100_v36 }
  0x35   :  { %2451 = vmatpush3.bf16.msra.mxu1 %v3130_v46 }
  0x36   :  { %2452 = vmatprep.subr.bf16.mxu1 %v2946_v40 }
  0x37   :  { %2433 = vmatpush1.bf16.msra.mxu0 %v3133_v47 }
  0x38   :  { %2435 = vmatprep.subr.bf16.mxu0 %v3143_v50 }
  0x39   :  { %2454 = vmatpush3.bf16.msra.mxu1 %v3165_v56 }
  0x3a   :  { %2455 = vmatprep.subr.bf16.mxu1 %v2946_v40 }
  0x3b   :  { %2437 = vmatpush1.bf16.msra.mxu0 %v3168_v57 }
  0x3c   :  { %2439 = vmatprep.subr.bf16.mxu0 %v3178_v60 }
  0x3d   :  { %2457 = vmatpush3.bf16.msra.mxu1 %v3200_v3 }
  0x3e   :  { %2458 = vmatprep.subr.bf16.mxu1 %v2946_v40 }
  0x3f   :  { %2441 = vmatpush1.bf16.msra.mxu0 %v3203_v4 }
  0x40   :  { %2443 = vmatprep.subr.bf16.mxu0 %v3216_v9 }
  0x41   :  { %2460 = vmatpush3.bf16.msra.mxu1 %v3229_v13 }
  0x42   :  { %2461 = vmatprep.subr.bf16.mxu1 %v2946_v40 }
  0x43   :  { %2445 = vmatpush1.bf16.msra.mxu0 %v3232_v14 }
  0x44   :  { %2471 = vmatprep.subr.bf16.mxu0 %v3008_v7 }
  0x45   :  { %2463 = vmatpush3.bf16.msra.mxu1 %v3247_v20 }
  0x46   :  { %2464 = vmatprep.subr.bf16.mxu1 %v2946_v40 }
  0x49   :  { %2466 = vmatpush3.bf16.msra.mxu1 %v3260_v23 }
  0x4a   :  { %2467 = vmatprep.subr.bf16.mxu1 %v2946_v40 }
  0x4d   :  { %2469 = vmatpush3.bf16.msra.mxu1 %v3273_v28 }
  0x4e   :  { %2502 = vmatprep.subr.bf16.mxu1 %v2946_v40 }
  0xe1   :  { %v2033_v35 = vpop.f32.mrb[0].mxu1 }
  0xe2   :  { %v3314_v37 = vadd.f32 %v2033_v35, %v50_v33  ;;  %v258_v38 = vpop.f32.mrb[1].mxu1 }
  0xe3   :  { %v259_v30 = vadd.f32 %v258_v38, %v50_v33 }
  0xe6   :  { %v2036_v39 = vpop.f32.mrb[2].mxu1 }
  0xe7   :  { %v3316_v42 = vadd.f32 %v2036_v39, %v50_v33  ;;  %v268_v43 = vpop.f32.mrb[3].mxu1 }
  0xe8   :  { %v3318_v44 = vadd.f32 %v268_v43, %v50_v33 }
  0xea   :  { %v2039_v45 = vpop.f32.mrb[4].mxu1 }
  0xeb   :  { %v3320_v48 = vadd.f32 %v2039_v45, %v50_v33  ;;  %v278_v49 = vpop.f32.mrb[5].mxu1 }
  0xec   :  { %v3322_v51 = vadd.f32 %v278_v49, %v50_v33 }
  0xee   :  { %v2042_v52 = vpop.f32.mrb[6].mxu1 }
  0xef   :  { %v3324_v53 = vadd.f32 %v2042_v52, %v50_v33  ;;  %v288_v54 = vpop.f32.mrb[7].mxu1 }
  0xf0   :  { %v3326_v58 = vadd.f32 %v288_v54, %v50_v33 }
  0xf9   :  { %v448_v62 = vpop.f32.mrb[0].mxu0 }
  0xfa   :  { %v2830_v0 = vadd.f32 %v448_v62, %v3328_v61  ;;  %v450_v1 = vpop.f32.mrb[1].mxu0 }
  0xfb   :  { %v2831_v6 = vadd.f32 %v450_v1, %v3330_v63 }
  0xfc   :  { %v1850_v5 = vmul.f32 -1.442695, %v2830_v0 }
  0xfd   :  { %v1851_v8 = vmul.f32 -1.442695, %v2831_v6 }
  0xfe   :  { %2865 = vpow2.f32 %v1850_v5 }
  0xff   :  { %2867 = vpow2.f32 %v1851_v8 }
 0x103   :  { %v519_v11 = vpop.f32.mrb[8].mxu1 }
 0x104   :  { %v2077_v12 = vpop.f32.mrb[9].mxu1  ;;  %v537_v27 = vadd.f32 %v3337_v22, %v519_v11 }
 0x108   :  { %v2866_v16 = vpop.eup %2865 }
 0x109   :  { %v527_v17 = vadd.f32 1.0, %v2866_v16  ;;  %v2868_v21 = vpop.eup %2867 }
 0x10a   :  { %v534_v24 = vadd.f32 1.0, %v2868_v21 }
 0x10b   :  { %2869 = vrcp.f32 %v527_v17 }
 0x10c   :  { %2871 = vrcp.f32 %v534_v24 }
 0x115   :  { %v2870_v29 = vpop.eup %2869 }
 0x116   :  { %v538_v31 = vmul.f32 %v2870_v29, %v537_v27  ;;  %v2872_v35 = vpop.eup %2871 }
 0x117   :  { %v541_v39 = vsub.f32 1.0, %v2872_v35  ;;  %v543_v49 = vmul.f32 0.0, %v2872_v35 }
 0x118   :  { %v539_v32 = vadd.f32 %v538_v31, %v259_v30 }
 0x11a   :  { %2873 = vtanh.f32 %v539_v32 }
 0x124   :  { %v2874_v43 = vpop.eup %2873 }
 0x125   :  { %v542_v45 = vmul.f32 %v2874_v43, %v541_v39 }
 0x127   :  { %v544_v52 = vadd.f32 %v543_v49, %v542_v45 }
 0x129   :  { %616 = vmatmul.mubr.f32.vlgmr.msra.gmra.mrb[2].mxu0 %v544_v52  ;;  %2111 = vmatmul.mubr.f32.vlgmr.msra.gmra.mrb[10].mxu1 %v544_v52 }
 0x12a   :  { %2473 = vmatpush1.bf16.msra.mxu0 %v3017_v10  ;;  %2504 = vmatpush3.bf16.msra.mxu1 %v3112_v41 }
 0x12b   :  { %2475 = vmatprep.subr.bf16.mxu0 %v3033_v15  ;;  %2505 = vmatprep.subr.bf16.mxu1 %v2946_v40 }
 0x12c   :  { %784 = vmatprep.mubr.f32.mxu0 %v2945_v2  ;;  %2145 = vmatprep.mubr.msk.f32.mxu1 %vm2947_vm1, %v2945_v2 }
 0x12e   :  { %2477 = vmatpush1.bf16.msra.mxu0 %v3042_v18  ;;  %2507 = vmatpush3.bf16.msra.mxu1 %v3130_v46 }
 0x12f   :  { %2479 = vmatprep.subr.bf16.mxu0 %v3045_v19  ;;  %2508 = vmatprep.subr.bf16.mxu1 %v2946_v40 }
 0x132   :  { %2481 = vmatpush1.bf16.msra.mxu0 %v3065_v25  ;;  %2510 = vmatpush3.bf16.msra.mxu1 %v3165_v56 }
 0x133   :  { %2483 = vmatprep.subr.bf16.mxu0 %v3068_v26  ;;  %2511 = vmatprep.subr.bf16.mxu1 %v2946_v40 }
 0x136   :  { %2485 = vmatpush1.bf16.msra.mxu0 %v3094_v34  ;;  %2513 = vmatpush3.bf16.msra.mxu1 %v3200_v3 }
 0x137   :  { %2487 = vmatprep.subr.bf16.mxu0 %v3100_v36  ;;  %2514 = vmatprep.subr.bf16.mxu1 %v2946_v40 }
 0x13a   :  { %2489 = vmatpush1.bf16.msra.mxu0 %v3133_v47  ;;  %2516 = vmatpush3.bf16.msra.mxu1 %v3229_v13 }
 0x13b   :  { %2491 = vmatprep.subr.bf16.mxu0 %v3143_v50  ;;  %2517 = vmatprep.subr.bf16.mxu1 %v2946_v40 }
 0x13e   :  { %2493 = vmatpush1.bf16.msra.mxu0 %v3168_v57  ;;  %2519 = vmatpush3.bf16.msra.mxu1 %v3247_v20 }
 0x13f   :  { %2495 = vmatprep.subr.bf16.mxu0 %v3178_v60  ;;  %2520 = vmatprep.subr.bf16.mxu1 %v2946_v40 }
 0x142   :  { %2497 = vmatpush1.bf16.msra.mxu0 %v3203_v4  ;;  %2522 = vmatpush3.bf16.msra.mxu1 %v3260_v23 }
 0x143   :  { %2499 = vmatprep.subr.bf16.mxu0 %v3216_v9  ;;  %2523 = vmatprep.subr.bf16.mxu1 %v2946_v40 }
 0x146   :  { %2501 = vmatpush1.bf16.msra.mxu0 %v3232_v14  ;;  %2525 = vmatpush3.bf16.msra.mxu1 %v3273_v28 }
 0x147   :  { %2527 = vmatprep.subr.bf16.mxu0 %v3008_v7  ;;  %2558 = vmatprep.subr.bf16.mxu1 %v2946_v40 }
 0x1fc   :  { %v617_v33 = vpop.f32.mrb[2].mxu0  ;;  %v688_v38 = vpop.f32.mrb[10].mxu1 }
 0x1fd   :  { %v2832_v54 = vadd.f32 %v617_v33, %v3328_v61  ;;  %v619_v55 = vpop.f32.mrb[3].mxu0  ;;  %v2112_v59 = vpop.f32.mrb[11].mxu1  ;;  %v706_v12 = vadd.f32 %v3337_v22, %v688_v38 }
 0x1fe   :  { %v2833_v0 = vadd.f32 %v619_v55, %v3330_v63 }
 0x1ff   :  { %v1852_v62 = vmul.f32 -1.442695, %v2832_v54 }
 0x200   :  { %v1853_v1 = vmul.f32 -1.442695, %v2833_v0 }
 0x201   :  { %2875 = vpow2.f32 %v1852_v62 }
 0x202   :  { %2877 = vpow2.f32 %v1853_v1 }
 0x20b   :  { %v2876_v5 = vpop.eup %2875 }
 0x20c   :  { %v696_v6 = vadd.f32 1.0, %v2876_v5  ;;  %v2878_v8 = vpop.eup %2877 }
 0x20d   :  { %v703_v11 = vadd.f32 1.0, %v2878_v8 }
 0x20e   :  { %2879 = vrcp.f32 %v696_v6 }
 0x20f   :  { %2881 = vrcp.f32 %v703_v11 }
 0x218   :  { %v2880_v16 = vpop.eup %2879 }
 0x219   :  { %v707_v17 = vmul.f32 %v2880_v16, %v706_v12  ;;  %v2882_v24 = vpop.eup %2881 }
 0x21a   :  { %v710_v27 = vsub.f32 1.0, %v2882_v24  ;;  %v712_v31 = vmul.f32 %v2882_v24, %v544_v52 }
 0x21b   :  { %v708_v21 = vadd.f32 %v707_v17, %v3314_v37 }
 0x21d   :  { %2883 = vtanh.f32 %v708_v21 }
 0x227   :  { %v2884_v29 = vpop.eup %2883 }
 0x228   :  { %v711_v30 = vmul.f32 %v2884_v29, %v710_v27 }
 0x22a   :  { %v713_v32 = vadd.f32 %v712_v31, %v711_v30 }
 0x22c   :  { %785 = vmatmul.mubr.f32.vlgmr.msra.gmra.mrb[4].mxu0 %v713_v32  ;;  %2146 = vmatmul.mubr.f32.vlgmr.msra.gmra.mrb[12].mxu1 %v713_v32 }
 0x22d   :  { %2529 = vmatpush1.bf16.msra.mxu0 %v3017_v10  ;;  %2560 = vmatpush3.bf16.msra.mxu1 %v3112_v41 }
 0x22e   :  { %2531 = vmatprep.subr.bf16.mxu0 %v3033_v15  ;;  %2561 = vmatprep.subr.bf16.mxu1 %v2946_v40 }
 0x22f   :  { %953 = vmatprep.mubr.f32.mxu0 %v2945_v2  ;;  %2180 = vmatprep.mubr.msk.f32.mxu1 %vm2947_vm1, %v2945_v2 }
 0x231   :  { %2533 = vmatpush1.bf16.msra.mxu0 %v3042_v18  ;;  %2563 = vmatpush3.bf16.msra.mxu1 %v3130_v46 }
 0x232   :  { %2535 = vmatprep.subr.bf16.mxu0 %v3045_v19  ;;  %2564 = vmatprep.subr.bf16.mxu1 %v2946_v40 }
 0x235   :  { %2537 = vmatpush1.bf16.msra.mxu0 %v3065_v25  ;;  %2566 = vmatpush3.bf16.msra.mxu1 %v3165_v56 }
 0x236   :  { %2539 = vmatprep.subr.bf16.mxu0 %v3068_v26  ;;  %2567 = vmatprep.subr.bf16.mxu1 %v2946_v40 }
 0x239   :  { %2541 = vmatpush1.bf16.msra.mxu0 %v3094_v34  ;;  %2569 = vmatpush3.bf16.msra.mxu1 %v3200_v3 }
 0x23a   :  { %2543 = vmatprep.subr.bf16.mxu0 %v3100_v36  ;;  %2570 = vmatprep.subr.bf16.mxu1 %v2946_v40 }
 0x23d   :  { %2545 = vmatpush1.bf16.msra.mxu0 %v3133_v47  ;;  %2572 = vmatpush3.bf16.msra.mxu1 %v3229_v13 }
 0x23e   :  { %2547 = vmatprep.subr.bf16.mxu0 %v3143_v50  ;;  %2573 = vmatprep.subr.bf16.mxu1 %v2946_v40 }
 0x241   :  { %2549 = vmatpush1.bf16.msra.mxu0 %v3168_v57  ;;  %2575 = vmatpush3.bf16.msra.mxu1 %v3247_v20 }
 0x242   :  { %2551 = vmatprep.subr.bf16.mxu0 %v3178_v60  ;;  %2576 = vmatprep.subr.bf16.mxu1 %v2946_v40 }
 0x245   :  { %2553 = vmatpush1.bf16.msra.mxu0 %v3203_v4  ;;  %2578 = vmatpush3.bf16.msra.mxu1 %v3260_v23 }
 0x246   :  { %2555 = vmatprep.subr.bf16.mxu0 %v3216_v9  ;;  %2579 = vmatprep.subr.bf16.mxu1 %v2946_v40 }
 0x249   :  { %2557 = vmatpush1.bf16.msra.mxu0 %v3232_v14  ;;  %2581 = vmatpush3.bf16.msra.mxu1 %v3273_v28 }
 0x24a   :  { %2583 = vmatprep.subr.bf16.mxu0 %v3008_v7  ;;  %2614 = vmatprep.subr.bf16.mxu1 %v2946_v40 }
 0x2ff   :  { %v786_v37 = vpop.f32.mrb[4].mxu0  ;;  %v857_v35 = vpop.f32.mrb[12].mxu1 }
 0x300   :  { %v2834_v39 = vadd.f32 %v786_v37, %v3328_v61  ;;  %v788_v43 = vpop.f32.mrb[5].mxu0  ;;  %v2147_v45 = vpop.f32.mrb[13].mxu1  ;;  %v875_v62 = vadd.f32 %v3337_v22, %v857_v35 }
 0x301   :  { %v2835_v52 = vadd.f32 %v788_v43, %v3330_v63 }
 0x302   :  { %v1854_v49 = vmul.f32 -1.442695, %v2834_v39 }
 0x303   :  { %v1855_v33 = vmul.f32 -1.442695, %v2835_v52 }
 0x304   :  { %2885 = vpow2.f32 %v1854_v49 }
 0x305   :  { %2887 = vpow2.f32 %v1855_v33 }
 0x30e   :  { %v2886_v38 = vpop.eup %2885 }
 0x30f   :  { %v865_v54 = vadd.f32 1.0, %v2886_v38  ;;  %v2888_v55 = vpop.eup %2887 }
 0x310   :  { %v872_v59 = vadd.f32 1.0, %v2888_v55 }
 0x311   :  { %2889 = vrcp.f32 %v865_v54 }
 0x312   :  { %2891 = vrcp.f32 %v872_v59 }
 0x31b   :  { %v2890_v0 = vpop.eup %2889 }
 0x31c   :  { %v876_v1 = vmul.f32 %v2890_v0, %v875_v62  ;;  %v2892_v6 = vpop.eup %2891 }
 0x31d   :  { %v879_v8 = vsub.f32 1.0, %v2892_v6  ;;  %v881_v16 = vmul.f32 %v2892_v6, %v713_v32 }
 0x31e   :  { %v877_v5 = vadd.f32 %v876_v1, %v3318_v44 }
 0x320   :  { %2893 = vtanh.f32 %v877_v5 }
 0x32a   :  { %v2894_v11 = vpop.eup %2893 }
 0x32b   :  { %v880_v12 = vmul.f32 %v2894_v11, %v879_v8 }
 0x32d   :  { %v882_v17 = vadd.f32 %v881_v16, %v880_v12 }
 0x32f   :  { %954 = vmatmul.mubr.f32.vlgmr.msra.gmra.mrb[6].mxu0 %v882_v17  ;;  %2181 = vmatmul.mubr.f32.vlgmr.msra.gmra.mrb[14].mxu1 %v882_v17 }
 0x330   :  { %2585 = vmatpush1.bf16.msra.mxu0 %v3017_v10  ;;  %2616 = vmatpush3.bf16.msra.mxu1 %v3112_v41 }
 0x331   :  { %2587 = vmatprep.subr.bf16.mxu0 %v3033_v15  ;;  %2617 = vmatprep.subr.bf16.mxu1 %v2946_v40 }
 0x332   :  { %1122 = vmatprep.mubr.f32.mxu0 %v2945_v2  ;;  %2215 = vmatprep.mubr.msk.f32.mxu1 %vm2947_vm1, %v2945_v2 }
 0x334   :  { %2589 = vmatpush1.bf16.msra.mxu0 %v3042_v18  ;;  %2619 = vmatpush3.bf16.msra.mxu1 %v3130_v46 }
 0x335   :  { %2591 = vmatprep.subr.bf16.mxu0 %v3045_v19  ;;  %2620 = vmatprep.subr.bf16.mxu1 %v2946_v40 }
 0x338   :  { %2593 = vmatpush1.bf16.msra.mxu0 %v3065_v25  ;;  %2622 = vmatpush3.bf16.msra.mxu1 %v3165_v56 }
 0x339   :  { %2595 = vmatprep.subr.bf16.mxu0 %v3068_v26  ;;  %2623 = vmatprep.subr.bf16.mxu1 %v2946_v40 }
 0x33c   :  { %2597 = vmatpush1.bf16.msra.mxu0 %v3094_v34  ;;  %2625 = vmatpush3.bf16.msra.mxu1 %v3200_v3 }
 0x33d   :  { %2599 = vmatprep.subr.bf16.mxu0 %v3100_v36  ;;  %2626 = vmatprep.subr.bf16.mxu1 %v2946_v40 }
 0x340   :  { %2601 = vmatpush1.bf16.msra.mxu0 %v3133_v47  ;;  %2628 = vmatpush3.bf16.msra.mxu1 %v3229_v13 }
 0x341   :  { %2603 = vmatprep.subr.bf16.mxu0 %v3143_v50  ;;  %2629 = vmatprep.subr.bf16.mxu1 %v2946_v40 }
 0x344   :  { %2605 = vmatpush1.bf16.msra.mxu0 %v3168_v57  ;;  %2631 = vmatpush3.bf16.msra.mxu1 %v3247_v20 }
 0x345   :  { %2607 = vmatprep.subr.bf16.mxu0 %v3178_v60  ;;  %2632 = vmatprep.subr.bf16.mxu1 %v2946_v40 }
 0x348   :  { %2609 = vmatpush1.bf16.msra.mxu0 %v3203_v4  ;;  %2634 = vmatpush3.bf16.msra.mxu1 %v3260_v23 }
 0x349   :  { %2611 = vmatprep.subr.bf16.mxu0 %v3216_v9  ;;  %2635 = vmatprep.subr.bf16.mxu1 %v2946_v40 }
 0x34c   :  { %2613 = vmatpush1.bf16.msra.mxu0 %v3232_v14  ;;  %2637 = vmatpush3.bf16.msra.mxu1 %v3273_v28 }
 0x34d   :  { %2639 = vmatprep.subr.bf16.mxu0 %v3008_v7  ;;  %2670 = vmatprep.subr.bf16.mxu1 %v2946_v40 }
 0x402   :  { %v955_v44 = vpop.f32.mrb[6].mxu0  ;;  %v1026_v21 = vpop.f32.mrb[14].mxu1 }
 0x403   :  { %v2836_v24 = vadd.f32 %v955_v44, %v3328_v61  ;;  %v957_v27 = vpop.f32.mrb[7].mxu0  ;;  %v2182_v29 = vpop.f32.mrb[15].mxu1  ;;  %v1044_v45 = vadd.f32 %v3337_v22, %v1026_v21 }
 0x404   :  { %v2837_v31 = vadd.f32 %v957_v27, %v3330_v63 }
 0x405   :  { %v1856_v30 = vmul.f32 -1.442695, %v2836_v24 }
 0x406   :  { %v1857_v32 = vmul.f32 -1.442695, %v2837_v31 }
 0x407   :  { %2895 = vpow2.f32 %v1856_v30 }
 0x408   :  { %2897 = vpow2.f32 %v1857_v32 }
 0x411   :  { %v2896_v37 = vpop.eup %2895 }
 0x412   :  { %v1034_v35 = vadd.f32 1.0, %v2896_v37  ;;  %v2898_v39 = vpop.eup %2897 }
 0x413   :  { %v1041_v43 = vadd.f32 1.0, %v2898_v39 }
 0x414   :  { %2899 = vrcp.f32 %v1034_v35 }
 0x415   :  { %2901 = vrcp.f32 %v1041_v43 }
 0x41e   :  { %v2900_v49 = vpop.eup %2899 }
 0x41f   :  { %v1045_v52 = vmul.f32 %v2900_v49, %v1044_v45  ;;  %v2902_v38 = vpop.eup %2901 }
 0x420   :  { %v1048_v54 = vsub.f32 1.0, %v2902_v38  ;;  %v1050_v62 = vmul.f32 %v2902_v38, %v882_v17 }
 0x421   :  { %v1046_v33 = vadd.f32 %v1045_v52, %v3316_v42 }
 0x423   :  { %2903 = vtanh.f32 %v1046_v33 }
 0x42d   :  { %v2904_v55 = vpop.eup %2903 }
 0x42e   :  { %v1049_v59 = vmul.f32 %v2904_v55, %v1048_v54 }
 0x430   :  { %v1051_v0 = vadd.f32 %v1050_v62, %v1049_v59 }
 0x432   :  { %1123 = vmatmul.mubr.f32.vlgmr.msra.gmra.mrb[8].mxu0 %v1051_v0  ;;  %2216 = vmatmul.mubr.f32.vlgmr.msra.gmra.mrb[16].mxu1 %v1051_v0 }
 0x433   :  { %2641 = vmatpush1.bf16.msra.mxu0 %v3017_v10  ;;  %2672 = vmatpush3.bf16.msra.mxu1 %v3112_v41 }
 0x434   :  { %2643 = vmatprep.subr.bf16.mxu0 %v3033_v15  ;;  %2673 = vmatprep.subr.bf16.mxu1 %v2946_v40 }
 0x435   :  { %1291 = vmatprep.mubr.f32.mxu0 %v2945_v2  ;;  %2250 = vmatprep.mubr.msk.f32.mxu1 %vm2947_vm1, %v2945_v2 }
 0x437   :  { %2645 = vmatpush1.bf16.msra.mxu0 %v3042_v18  ;;  %2675 = vmatpush3.bf16.msra.mxu1 %v3130_v46 }
 0x438   :  { %2647 = vmatprep.subr.bf16.mxu0 %v3045_v19  ;;  %2676 = vmatprep.subr.bf16.mxu1 %v2946_v40 }
 0x43b   :  { %2649 = vmatpush1.bf16.msra.mxu0 %v3065_v25  ;;  %2678 = vmatpush3.bf16.msra.mxu1 %v3165_v56 }
 0x43c   :  { %2651 = vmatprep.subr.bf16.mxu0 %v3068_v26  ;;  %2679 = vmatprep.subr.bf16.mxu1 %v2946_v40 }
 0x43f   :  { %2653 = vmatpush1.bf16.msra.mxu0 %v3094_v34  ;;  %2681 = vmatpush3.bf16.msra.mxu1 %v3200_v3 }
 0x440   :  { %2655 = vmatprep.subr.bf16.mxu0 %v3100_v36  ;;  %2682 = vmatprep.subr.bf16.mxu1 %v2946_v40 }
 0x443   :  { %2657 = vmatpush1.bf16.msra.mxu0 %v3133_v47  ;;  %2684 = vmatpush3.bf16.msra.mxu1 %v3229_v13 }
 0x444   :  { %2659 = vmatprep.subr.bf16.mxu0 %v3143_v50  ;;  %2685 = vmatprep.subr.bf16.mxu1 %v2946_v40 }
 0x447   :  { %2661 = vmatpush1.bf16.msra.mxu0 %v3168_v57  ;;  %2687 = vmatpush3.bf16.msra.mxu1 %v3247_v20 }
 0x448   :  { %2663 = vmatprep.subr.bf16.mxu0 %v3178_v60  ;;  %2688 = vmatprep.subr.bf16.mxu1 %v2946_v40 }
 0x44b   :  { %2665 = vmatpush1.bf16.msra.mxu0 %v3203_v4  ;;  %2690 = vmatpush3.bf16.msra.mxu1 %v3260_v23 }
 0x44c   :  { %2667 = vmatprep.subr.bf16.mxu0 %v3216_v9  ;;  %2691 = vmatprep.subr.bf16.mxu1 %v2946_v40 }
 0x44f   :  { %2669 = vmatpush1.bf16.msra.mxu0 %v3232_v14  ;;  %2693 = vmatpush3.bf16.msra.mxu1 %v3273_v28 }
 0x450   :  { %2695 = vmatprep.subr.bf16.mxu0 %v3008_v7  ;;  %2726 = vmatprep.subr.bf16.mxu1 %v2946_v40 }
 0x505   :  { %v1124_v42 = vpop.f32.mrb[8].mxu0  ;;  %v1195_v1 = vpop.f32.mrb[16].mxu1 }
 0x506   :  { %v2838_v5 = vadd.f32 %v1124_v42, %v3328_v61  ;;  %v1126_v6 = vpop.f32.mrb[9].mxu0  ;;  %v2217_v8 = vpop.f32.mrb[17].mxu1  ;;  %v1213_v27 = vadd.f32 %v3337_v22, %v1195_v1 }
 0x507   :  { %v2839_v12 = vadd.f32 %v1126_v6, %v3330_v63 }
 0x508   :  { %v1858_v11 = vmul.f32 -1.442695, %v2838_v5 }
 0x509   :  { %v1859_v16 = vmul.f32 -1.442695, %v2839_v12 }
 0x50a   :  { %2905 = vpow2.f32 %v1858_v11 }
 0x50b   :  { %2907 = vpow2.f32 %v1859_v16 }
 0x514   :  { %v2906_v17 = vpop.eup %2905 }
 0x515   :  { %v1203_v44 = vadd.f32 1.0, %v2906_v17  ;;  %v2908_v21 = vpop.eup %2907 }
 0x516   :  { %v1210_v24 = vadd.f32 1.0, %v2908_v21 }
 0x517   :  { %2909 = vrcp.f32 %v1203_v44 }
 0x518   :  { %2911 = vrcp.f32 %v1210_v24  ;;  %v1730_v24 = vld [vmem:[%s3650_s5 + $0x10] sm:$0xff] }
 0x521   :  { %v2910_v29 = vpop.eup %2909 }
 0x522   :  { %v1214_v30 = vmul.f32 %v2910_v29, %v1213_v27  ;;  %v2912_v32 = vpop.eup %2911  ;;  %v1732_v29 = vld [vmem:[%s3650_s5 + $0x20] sm:$0xff] }
 0x523   :  { %v1217_v37 = vsub.f32 1.0, %v2912_v32  ;;  %v1219_v43 = vmul.f32 %v2912_v32, %v1051_v0  ;;  %v1734_v32 = vld [vmem:[%s3650_s5 + $0x30] sm:$0xff] }
 0x524   :  { %v1215_v31 = vadd.f32 %v1214_v30, %v3322_v51  ;;  %v1733_v30 = vld [vmem:[%s3650_s5 + $0x28] sm:$0xff] }
 0x526   :  { %2913 = vtanh.f32 %v1215_v31  ;;  %v2813_v31 = vpack.c.bf16 %v1733_v30, %v1732_v29 }
 0x530   :  { %v2914_v35 = vpop.eup %2913 }
 0x531   :  { %v1218_v39 = vmul.f32 %v2914_v35, %v1217_v37  ;;  %v1735_v37 = vld [vmem:[%s3650_s5 + $0x38] sm:$0xff] }
 0x532   :  { %v2816_v35 = vpack.c.bf16 %v1735_v37, %v1734_v32 }
 0x533   :  { %v1220_v45 = vadd.f32 %v1219_v43, %v1218_v39  ;;  %v1736_v39 = vld [vmem:[%s3650_s5 + $0x40] sm:$0xff]  ;;  %v1737_v43 = vld [vmem:[%s3650_s5 + $0x48] sm:$0xff] }
 0x535   :  { %1292 = vmatmul.mubr.f32.vlgmr.msra.gmra.mrb[10].mxu0 %v1220_v45  ;;  %2251 = vmatmul.mubr.f32.vlgmr.msra.gmra.mrb[18].mxu1 %v1220_v45 }
 0x536   :  { %2697 = vmatpush1.bf16.msra.mxu0 %v3017_v10  ;;  %2728 = vmatpush3.bf16.msra.mxu1 %v3112_v41 }
 0x537   :  { %2699 = vmatprep.subr.bf16.mxu0 %v3033_v15  ;;  %2729 = vmatprep.subr.bf16.mxu1 %v2946_v40 }
 0x538   :  { %1460 = vmatprep.mubr.f32.mxu0 %v2945_v2  ;;  %2285 = vmatprep.mubr.msk.f32.mxu1 %vm2947_vm1, %v2945_v2 }
 0x53a   :  { %2701 = vmatpush1.bf16.msra.mxu0 %v3042_v18  ;;  %2731 = vmatpush3.bf16.msra.mxu1 %v3130_v46 }
 0x53b   :  { %2703 = vmatprep.subr.bf16.mxu0 %v3045_v19  ;;  %2732 = vmatprep.subr.bf16.mxu1 %v2946_v40 }
 0x53e   :  { %2705 = vmatpush1.bf16.msra.mxu0 %v3065_v25  ;;  %2734 = vmatpush3.bf16.msra.mxu1 %v3165_v56 }
 0x53f   :  { %2707 = vmatprep.subr.bf16.mxu0 %v3068_v26  ;;  %2735 = vmatprep.subr.bf16.mxu1 %v2946_v40 }
 0x542   :  { %2709 = vmatpush1.bf16.msra.mxu0 %v3094_v34  ;;  %2737 = vmatpush3.bf16.msra.mxu1 %v3200_v3 }
 0x543   :  { %2711 = vmatprep.subr.bf16.mxu0 %v3100_v36  ;;  %2738 = vmatprep.subr.bf16.mxu1 %v2946_v40 }
 0x546   :  { %2713 = vmatpush1.bf16.msra.mxu0 %v3133_v47  ;;  %2740 = vmatpush3.bf16.msra.mxu1 %v3229_v13 }
 0x547   :  { %2715 = vmatprep.subr.bf16.mxu0 %v3143_v50  ;;  %2741 = vmatprep.subr.bf16.mxu1 %v2946_v40 }
 0x54a   :  { %2717 = vmatpush1.bf16.msra.mxu0 %v3168_v57  ;;  %2743 = vmatpush3.bf16.msra.mxu1 %v3247_v20 }
 0x54b   :  { %2719 = vmatprep.subr.bf16.mxu0 %v3178_v60  ;;  %2744 = vmatprep.subr.bf16.mxu1 %v2946_v40 }
 0x54e   :  { %2721 = vmatpush1.bf16.msra.mxu0 %v3203_v4  ;;  %2746 = vmatpush3.bf16.msra.mxu1 %v3260_v23 }
 0x54f   :  { %2723 = vmatprep.subr.bf16.mxu0 %v3216_v9  ;;  %2747 = vmatprep.subr.bf16.mxu1 %v2946_v40 }
 0x552   :  { %2725 = vmatpush1.bf16.msra.mxu0 %v3232_v14  ;;  %2749 = vmatpush3.bf16.msra.mxu1 %v3273_v28 }
 0x553   :  { %2751 = vmatprep.subr.bf16.mxu0 %v3008_v7  ;;  %2782 = vmatprep.subr.bf16.mxu1 %v2946_v40 }
 0x608   :  { %v1293_v51 = vpop.f32.mrb[10].mxu0  ;;  %v1364_v49 = vpop.f32.mrb[18].mxu1 }
 0x609   :  { %v2840_v52 = vadd.f32 %v1293_v51, %v3328_v61  ;;  %v1295_v33 = vpop.f32.mrb[11].mxu0  ;;  %v2252_v38 = vpop.f32.mrb[19].mxu1  ;;  %v1382_v7 = vadd.f32 %v3337_v22, %v1364_v49  ;;  %v1738_v51 = vld [vmem:[%s3650_s5 + $0x50] sm:$0xff]  ;;  %v1739_v49 = vld [vmem:[%s3650_s5 + $0x58] sm:$0xff] }
 0x60a   :  { %v2841_v55 = vadd.f32 %v1295_v33, %v3330_v63  ;;  %v1740_v33 = vld [vmem:[%s3650_s5 + $0x60] sm:$0xff]  ;;  %v1741_v38 = vld [vmem:[%s3650_s5 + $0x68] sm:$0xff] }
 0x60b   :  { %v1860_v54 = vmul.f32 -1.442695, %v2840_v52  ;;  %v2822_v52 = vpack.c.bf16 %v1739_v49, %v1738_v51 }
 0x60c   :  { %v1861_v59 = vmul.f32 -1.442695, %v2841_v55  ;;  %v1742_v55 = vld [vmem:[%s3650_s5 + $0x70] sm:$0xff] }
 0x60d   :  { %2915 = vpow2.f32 %v1860_v54  ;;  %v2825_v54 = vpack.c.bf16 %v1741_v38, %v1740_v33 }
 0x60e   :  { %2917 = vpow2.f32 %v1861_v59  ;;  %v1743_v59 = vld [vmem:[%s3650_s5 + $0x78] sm:$0xff] }
 0x617   :  { %v2916_v62 = vpop.eup %2915 }
 0x618   :  { %v1372_v0 = vadd.f32 1.0, %v2916_v62  ;;  %v2918_v42 = vpop.eup %2917  ;;  %v2828_v62 = vpack.c.bf16 %v1743_v59, %v1742_v55 }
 0x619   :  { %v1379_v1 = vadd.f32 1.0, %v2918_v42 }
 0x61a   :  { %2919 = vrcp.f32 %v1372_v0 }
 0x61b   :  { %2921 = vrcp.f32 %v1379_v1 }
 0x624   :  { %v2920_v5 = vpop.eup %2919 }
 0x625   :  { %v1383_v6 = vmul.f32 %v2920_v5, %v1382_v7  ;;  %v2922_v11 = vpop.eup %2921 }
 0x626   :  { %v1386_v12 = vsub.f32 1.0, %v2922_v11  ;;  %v1388_v44 = vmul.f32 %v2922_v11, %v1220_v45  ;;  %v2819_v45 = vpack.c.bf16 %v1737_v43, %v1736_v39 }
 0x627   :  { %v1384_v8 = vadd.f32 %v1383_v6, %v3320_v48  ;;  %v1729_v48 = vld [vmem:[%s3650_s5 + $0x8] sm:$0xff] }
 0x629   :  { %2923 = vtanh.f32 %v1384_v8 }
 0x633   :  { %v2924_v16 = vpop.eup %2923 }
 0x634   :  { %v1387_v17 = vmul.f32 %v2924_v16, %v1386_v12 }
 0x636   :  { %v1389_v21 = vadd.f32 %v1388_v44, %v1387_v17 }
 0x638   :  { %1461 = vmatmul.mubr.f32.vlgmr.msra.gmra.mrb[12].mxu0 %v1389_v21  ;;  %2286 = vmatmul.mubr.f32.vlgmr.msra.gmra.mrb[20].mxu1 %v1389_v21 }
 0x639   :  { %2753 = vmatpush1.bf16.msra.mxu0 %v3017_v10  ;;  %2784 = vmatpush3.bf16.msra.mxu1 %v3112_v41 }
 0x63a   :  { %2755 = vmatprep.subr.bf16.mxu0 %v3033_v15  ;;  %2785 = vmatprep.subr.bf16.mxu1 %v2946_v40 }
 0x63b   :  { %1629 = vmatprep.mubr.f32.mxu0 %v2945_v2  ;;  %2320 = vmatprep.mubr.msk.f32.mxu1 %vm2947_vm1, %v2945_v2 }
 0x63d   :  { %2757 = vmatpush1.bf16.msra.mxu0 %v3042_v18  ;;  %2787 = vmatpush3.bf16.msra.mxu1 %v3130_v46 }
 0x63e   :  { %2759 = vmatprep.subr.bf16.mxu0 %v3045_v19  ;;  %2788 = vmatprep.subr.bf16.mxu1 %v2946_v40 }
 0x641   :  { %2761 = vmatpush1.bf16.msra.mxu0 %v3065_v25  ;;  %2790 = vmatpush3.bf16.msra.mxu1 %v3165_v56 }
 0x642   :  { %2763 = vmatprep.subr.bf16.mxu0 %v3068_v26  ;;  %2791 = vmatprep.subr.bf16.mxu1 %v2946_v40 }
 0x645   :  { %2765 = vmatpush1.bf16.msra.mxu0 %v3094_v34  ;;  %2793 = vmatpush3.bf16.msra.mxu1 %v3200_v3 }
 0x646   :  { %2767 = vmatprep.subr.bf16.mxu0 %v3100_v36  ;;  %2794 = vmatprep.subr.bf16.mxu1 %v2946_v40 }
 0x649   :  { %2769 = vmatpush1.bf16.msra.mxu0 %v3133_v47  ;;  %2796 = vmatpush3.bf16.msra.mxu1 %v3229_v13 }
 0x64a   :  { %2771 = vmatprep.subr.bf16.mxu0 %v3143_v50  ;;  %2797 = vmatprep.subr.bf16.mxu1 %v2946_v40 }
 0x64d   :  { %2773 = vmatpush1.bf16.msra.mxu0 %v3168_v57  ;;  %2799 = vmatpush3.bf16.msra.mxu1 %v3247_v20 }
 0x64e   :  { %2775 = vmatprep.subr.bf16.mxu0 %v3178_v60  ;;  %2800 = vmatprep.subr.bf16.mxu1 %v2946_v40 }
 0x651   :  { %2777 = vmatpush1.bf16.msra.mxu0 %v3203_v4  ;;  %2802 = vmatpush3.bf16.msra.mxu1 %v3260_v23 }
 0x652   :  { %2779 = vmatprep.subr.bf16.mxu0 %v3216_v9  ;;  %2803 = vmatprep.subr.bf16.mxu1 %v2946_v40 }
 0x655   :  { %2781 = vmatpush1.bf16.msra.mxu0 %v3232_v14  ;;  %2805 = vmatpush3.bf16.msra.mxu1 %v3273_v28  ;;  %v1728_v28 = vld [vmem:[%s3650_s5] sm:$0xff] }
 0x656   :  { %2806 = vmatprep.subr.bf16.mxu0 %v2946_v40 }
 0x70b   :  { %v1462_v10 = vpop.f32.mrb[12].mxu0  ;;  %v1533_v15 = vpop.f32.mrb[20].mxu1 }
 0x70c   :  { %v2842_v18 = vadd.f32 %v1462_v10, %v3328_v61  ;;  %v1464_v19 = vpop.f32.mrb[13].mxu0  ;;  %v2287_v25 = vpop.f32.mrb[21].mxu1  ;;  %v1551_v56 = vadd.f32 %v3337_v22, %v1533_v15 }
 0x70d   :  { %v2843_v34 = vadd.f32 %v1464_v19, %v3330_v63 }
 0x70e   :  { %v1862_v26 = vmul.f32 -1.442695, %v2842_v18 }
 0x70f   :  { %v1863_v36 = vmul.f32 -1.442695, %v2843_v34  ;;  %v1866_v34 = vld [vmem:[%s3651_s6] ss:$0 sm:$0xff] }
 0x710   :  { %2925 = vpow2.f32 %v1862_v26 }
 0x711   :  { %2927 = vpow2.f32 %v1863_v36 }
 0x71a   :  { %v2926_v41 = vpop.eup %2925 }
 0x71b   :  { %v1541_v46 = vadd.f32 1.0, %v2926_v41  ;;  %v2928_v47 = vpop.eup %2927 }
 0x71c   :  { %v1548_v50 = vadd.f32 1.0, %v2928_v47 }
 0x71d   :  { %2929 = vrcp.f32 %v1541_v46 }
 0x71e   :  { %2931 = vrcp.f32 %v1548_v50 }
 0x727   :  { %v2930_v57 = vpop.eup %2929 }
 0x728   :  { %v1552_v60 = vmul.f32 %v2930_v57, %v1551_v56  ;;  %v2932_v4 = vpop.eup %2931 }
 0x729   :  { %v1555_v9 = vsub.f32 1.0, %v2932_v4  ;;  %v1557_v20 = vmul.f32 %v2932_v4, %v1389_v21 }
 0x72a   :  { %v1553_v3 = vadd.f32 %v1552_v60, %v3326_v58  ;;  %v2807_v58 = vpack.c.bf16 %v1729_v48, %v1728_v28 }
 0x72c   :  { %2933 = vtanh.f32 %v1553_v3 }
 0x736   :  { %v2934_v13 = vpop.eup %2933 }
 0x737   :  { %v1556_v14 = vmul.f32 %v2934_v13, %v1555_v9 }
 0x739   :  { %v3573_v23 = vadd.f32 %v1557_v20, %v1556_v14 }
 0x73b   :  { %1630 = vmatmul.mubr.f32.vlgmr.msra.gmra.mrb[14].mxu0 %v3573_v23  ;;  %2321 = vmatmul.mubr.f32.vlgmr.msra.gmra.mrb[22].mxu1 %v3573_v23 }
 0x73c   :  { %2355 = vmatprep.mubr.msk.f32.mxu0 %vm2947_vm1, %v2945_v2  ;;  %2808 = vmatpush3.bf16.msra.mxu0 %v2807_v58  ;;  %v1731_v2 = vld [vmem:[%s3650_s5 + $0x18] sm:$0xff] }
 0x73d   :  { %2809 = vmatprep.subr.bf16.mxu0 %v2946_v40  ;;  %v2810_v27 = vpack.c.bf16 %v1731_v2, %v1730_v24 }
 0x740   :  { %2811 = vmatpush3.bf16.msra.mxu0 %v2810_v27 }
 0x741   :  { %2812 = vmatprep.subr.bf16.mxu0 %v2946_v40 }
 0x744   :  { %2814 = vmatpush3.bf16.msra.mxu0 %v2813_v31 }
 0x745   :  { %2815 = vmatprep.subr.bf16.mxu0 %v2946_v40 }
 0x748   :  { %2817 = vmatpush3.bf16.msra.mxu0 %v2816_v35 }
 0x749   :  { %2818 = vmatprep.subr.bf16.mxu0 %v2946_v40 }
 0x74c   :  { %2820 = vmatpush3.bf16.msra.mxu0 %v2819_v45 }
 0x74d   :  { %2821 = vmatprep.subr.bf16.mxu0 %v2946_v40 }
 0x750   :  { %2823 = vmatpush3.bf16.msra.mxu0 %v2822_v52 }
 0x751   :  { %2824 = vmatprep.subr.bf16.mxu0 %v2946_v40 }
 0x754   :  { %2826 = vmatpush3.bf16.msra.mxu0 %v2825_v54 }
 0x755   :  { %2827 = vmatprep.subr.bf16.mxu0 %v2946_v40 }
 0x758   :  { %2829 = vmatpush3.bf16.msra.mxu0 %v2828_v62 }
 0x80e   :  { %v1631_v0 = vpop.f32.mrb[14].mxu0  ;;  %v1702_v42 = vpop.f32.mrb[22].mxu1 }
 0x80f   :  { %v2844_v1 = vadd.f32 %v1631_v0, %v3328_v61  ;;  %v1633_v7 = vpop.f32.mrb[15].mxu0  ;;  %v2322_v5 = vpop.f32.mrb[23].mxu1  ;;  %v1720_v40 = vadd.f32 %v3337_v22, %v1702_v42 }
 0x810   :  { %v2845_v8 = vadd.f32 %v1633_v7, %v3330_v63 }
 0x811   :  { %v1864_v6 = vmul.f32 -1.442695, %v2844_v1 }
 0x812   :  { %v1865_v11 = vmul.f32 -1.442695, %v2845_v8 }
 0x813   :  { %2935 = vpow2.f32 %v1864_v6 }
 0x814   :  { %2937 = vpow2.f32 %v1865_v11 }
 0x81d   :  { %v2936_v12 = vpop.eup %2935 }
 0x81e   :  { %v1710_v16 = vadd.f32 1.0, %v2936_v12  ;;  %v2938_v17 = vpop.eup %2937 }
 0x81f   :  { %v1717_v44 = vadd.f32 1.0, %v2938_v17 }
 0x820   :  { %2939 = vrcp.f32 %v1710_v16 }
 0x821   :  { %2941 = vrcp.f32 %v1717_v44 }
 0x82a   :  { %v2940_v21 = vpop.eup %2939 }
 0x82b   :  { %v1721_v10 = vmul.f32 %v2940_v21, %v1720_v40  ;;  %v2942_v15 = vpop.eup %2941 }
 0x82c   :  { %v1724_v18 = vsub.f32 1.0, %v2942_v15  ;;  %v1726_v25 = vmul.f32 %v2942_v15, %v3573_v23 }
 0x82d   :  { %v1722_v61 = vadd.f32 %v1721_v10, %v3324_v53 }
 0x82f   :  { %2943 = vtanh.f32 %v1722_v61 }
 0x839   :  { %v2944_v19 = vpop.eup %2943 }
 0x83a   :  { %v1725_v63 = vmul.f32 %v2944_v19, %v1724_v18 }
 0x83c   :  { %v1727_v26 = vadd.f32 %v1726_v25, %v1725_v63 }
 0x83e   :  { %2356 = vmatmul.mubr.f32.vlgmr.msra.gmra.mrb[16].mxu0 %v1727_v26 }
 0x911   :  { %v1817_v36 = vpop.f32.mrb[16].mxu0 }
 0x912   :  { %v1818_v22 = vadd.f32 %v1866_v34, %v1817_v36  ;;  %v2357_v41 = vpop.f32.mrb[17].mxu0 }
 0x914   :  { %1821 = vst [vmem:[%s3652_s7] sm:$0xff] %v1818_v22 }

</bundles_post_ra>
